<compile_context>
chip_gen: v7x
topology: tpu7x:2x2x1
jax: 0.10.0
libtpu: 0.0.40
codegen_flags: <defaults>
</compile_context>

<pallas_src>
import functools

import jax
import jax.numpy as jnp
from jax.experimental import pallas as pl
from jax.experimental.pallas import tpu as pltpu


def _cac_kernel(dep_ref, rgb_ref, xmask_ref, ymask_ref,
                w1d_m_ref, w1r_m_ref, b1_m_ref, w2_m_ref, b2_m_ref,
                w1d_a_ref, w1r_a_ref, b1_a_ref, w2_a_ref, b2_a_ref,
                w5_ref, b5_ref,
                out_dep_ref, out_rgb_ref,
                *, nb, h, w):
    c = dep_ref.shape[1]
    hw = h * w
    inv_hw = 1.0 / float(hw)
    inv_2c = 1.0 / float(2 * c)

    # Small weights: untiled VMEM residents, loaded once (hoisted out of loops).
    w1d_m = w1d_m_ref[...]
    w1r_m = w1r_m_ref[...]
    b1_m = b1_m_ref[...]
    w2_m = w2_m_ref[...]
    b2_m = b2_m_ref[...]
    w1d_a = w1d_a_ref[...]
    w1r_a = w1r_a_ref[...]
    b1_a = b1_a_ref[...]
    w2_a = w2_a_ref[...]
    b2_a = b2_a_ref[...]
    b5 = b5_ref[0]

    def sigmoid(x):
        # exp -> EUP, approximate reciprocal -> EUP rcp path (keeps VPU free).
        return pl.reciprocal(1.0 + jnp.exp(-x), approx=True)

    def mlp(pd, pr, w1d, w1r, b1, w2, b2):
        # VPU formulation of the 1x1-conv MLP: (2C -> 8) ReLU (8 -> C).
        # pd, pr: (C, 1) pooled columns; w1d/w1r: (C, 8); b1: (1, 8);
        # w2: (C, 8); b2: (C, 1).  No MXU round-trips, no transposes.
        hid = (jnp.sum(w1d * pd, axis=0, keepdims=True)
               + jnp.sum(w1r * pr, axis=0, keepdims=True) + b1)       # (1, 8)
        hid = jnp.maximum(hid, 0.0)
        return jnp.sum(w2 * hid, axis=1, keepdims=True) + b2          # (C, 1)

    # nb is small by construction (block ~1 MiB); static unroll over images.
    for idx in range(nb):
        dep = dep_ref[idx]                                   # (C, HW) lane-dense
        rgb = rgb_ref[idx]

        # ---------- channel attention (global max / avg pool + MLPs) ----------
        max_d = jnp.max(dep, axis=1, keepdims=True)          # (C, 1)
        max_r = jnp.max(rgb, axis=1, keepdims=True)
        avg_d = jnp.sum(dep, axis=1, keepdims=True) * inv_hw
        avg_r = jnp.sum(rgb, axis=1, keepdims=True) * inv_hw
        z = (mlp(max_d, max_r, w1d_m, w1r_m, b1_m, w2_m, b2_m)
             + mlp(avg_d, avg_r, w1d_a, w1r_a, b1_a, w2_a, b2_a))
        channel_att = sigmoid(z)                              # (C, 1) column

        # ---------- spatial attention (channel mean/max + 5x5 conv) -----------
        mean_sp = (jnp.sum(dep, axis=0, keepdims=True)
                   + jnp.sum(rgb, axis=0, keepdims=True)) * inv_2c    # (1, HW)
        max_sp = jnp.maximum(jnp.max(dep, axis=0, keepdims=True),
                             jnp.max(rgb, axis=0, keepdims=True))     # (1, HW)

        # Zero-padded 5x5 cross-correlation fully in registers: the neighbor
        # (y+dy, x+dx) of flat index i is flat index i + dy*W + dx, i.e. a roll
        # by -(dy*W + dx); wrapped / out-of-image taps are zeroed by the
        # host-precomputed border masks.  Rolls land on the XLU slot.
        acc = jnp.zeros((1, hw), jnp.float32)
        for dy in range(-2, 3):
            ym_row = ymask_ref[dy + 2:dy + 3, :]              # (1, HW)
            for dx in range(-2, 3):
                shift = (-(dy * w + dx)) % hw
                if shift:
                    rm = pltpu.roll(mean_sp, shift, axis=1)
                    rx = pltpu.roll(max_sp, shift, axis=1)
                else:
                    rm, rx = mean_sp, max_sp
                wm = w5_ref[(dy + 2) * 5 + (dx + 2)]          # tap, mean channel
                wx = w5_ref[25 + (dy + 2) * 5 + (dx + 2)]     # tap, max channel
                xm_row = xmask_ref[dx + 2:dx + 3, :]          # (1, HW)
                acc = acc + (wm * rm + wx * rx) * (xm_row * ym_row)
        spatial_att = sigmoid(jnp.maximum(acc + b5, 0.0))     # (1, HW)

        # ---------- combine & apply (column x row broadcast, no relayout) -----
        att = channel_att * spatial_att                       # (C, HW)
        out_dep_ref[idx] = (att * dep).astype(out_dep_ref.dtype)
        out_rgb_ref[idx] = (att * rgb).astype(out_rgb_ref.dtype)


def _pick_batch_block(n, c, hw, itemsize=4, target_bytes=1 << 20):
    """Pack images per grid step so each step moves ~1 MiB of HBM traffic,
    while keeping >= 2 grid iterations (v7x megacore) when possible."""
    per_img = 4 * c * hw * itemsize            # dep + rgb in, dep + rgb out
    nb = max(1, target_bytes // max(per_img, 1))
    if n >= 2:
        nb = min(nb, n // 2)
    nb = max(1, min(nb, n))
    while n % nb:
        nb -= 1
    return nb


def cac_forward(dep, rgb, params, *, batch_block=None, out_dtype=None):
    n, c, h, w = dep.shape
    hw = h * w
    f32 = jnp.float32
    out_dtype = dep.dtype if out_dtype is None else out_dtype
    # TODO(synk): pass out_dtype=jnp.bfloat16 if downstream tolerates it --
    # cuts ~1/3 of HBM traffic on this bandwidth-bound kernel.

    # Lane-dense presentation: (N, C, H*W) so HW >= 128 maps onto lanes.
    dep2 = dep.reshape(n, c, hw)
    rgb2 = rgb.reshape(n, c, hw)

    # ---- re-layout (torch-layout) parameters for the kernel ----
    def split_w1(w1):                          # (8, 2C) -> two (C, 8) halves
        return jnp.transpose(w1[:, :c]), jnp.transpose(w1[:, c:])

    w1d_m, w1r_m = split_w1(params["w1m"])
    b1_m = params["b1m"].reshape(1, 8)
    w2_m = params["w2m"]                       # (C, 8)
    b2_m = params["b2m"].reshape(c, 1)
    w1d_a, w1r_a = split_w1(params["w1a"])
    b1_a = params["b1a"].reshape(1, 8)
    w2_a = params["w2a"]
    b2_a = params["b2a"].reshape(c, 1)
    w5_flat = params["w5"].reshape(-1).astype(f32)    # (50,), order (in_c, kh, kw)
    b5 = params["b5"].reshape(1).astype(f32)

    # Border masks for the zero-padded 5x5 conv, one row per tap offset,
    # built host-side (avoids in-kernel integer div/mod and iota relayouts).
    cols = jnp.arange(hw, dtype=jnp.int32) % w
    rows = jnp.arange(hw, dtype=jnp.int32) // w
    xmask = jnp.stack([((cols + dx >= 0) & (cols + dx < w)).astype(f32)
                       for dx in range(-2, 3)])        # (5, HW)
    ymask = jnp.stack([((rows + dy >= 0) & (rows + dy < h)).astype(f32)
                       for dy in range(-2, 3)])        # (5, HW)

    nb = _pick_batch_block(n, c, hw) if batch_block is None else batch_block
    assert n % nb == 0

    img_spec = pl.BlockSpec((nb, c, hw), lambda i: (i, 0, 0))
    vmem_spec = pl.BlockSpec(memory_space=pltpu.MemorySpace.VMEM)
    smem_spec = pl.BlockSpec(memory_space=pltpu.MemorySpace.SMEM)

    kernel = functools.partial(_cac_kernel, nb=nb, h=h, w=w)

    out_dep2, out_rgb2 = pl.pallas_call(
        kernel,
        out_shape=(jax.ShapeDtypeStruct((n, c, hw), out_dtype),
                   jax.ShapeDtypeStruct((n, c, hw), out_dtype)),
        grid=(n // nb,),
        in_specs=[img_spec, img_spec, vmem_spec, vmem_spec]
                 + [vmem_spec] * 10
                 + [smem_spec, smem_spec],
        out_specs=(img_spec, img_spec),
        compiler_params=pltpu.CompilerParams(
            dimension_semantics=("parallel",)),
    )(dep2, rgb2, xmask, ymask,
      w1d_m, w1r_m, b1_m, w2_m, b2_m,
      w1d_a, w1r_a, b1_a, w2_a, b2_a,
      w5_flat, b5)

    return out_dep2.reshape(n, c, h, w), out_rgb2.reshape(n, c, h, w)


def init_params(key, C):
    ks = jax.random.split(key, 10)
    s = 0.1
    f32 = jnp.float32
    return {
        "w1m": s * jax.random.normal(ks[0], (8, 2 * C), f32),    # conv1x1 (2C->8)
        "b1m": s * jax.random.normal(ks[1], (8,), f32),
        "w2m": s * jax.random.normal(ks[2], (C, 8), f32),        # conv1x1 (8->C)
        "b2m": s * jax.random.normal(ks[3], (C,), f32),
        "w1a": s * jax.random.normal(ks[4], (8, 2 * C), f32),
        "b1a": s * jax.random.normal(ks[5], (8,), f32),
        "w2a": s * jax.random.normal(ks[6], (C, 8), f32),
        "b2a": s * jax.random.normal(ks[7], (C,), f32),
        "w5":  s * jax.random.normal(ks[8], (1, 2, 5, 5), f32),  # conv5x5 (2->1), pad=2
        "b5":  s * jax.random.normal(ks[9], (1,), f32),
    }


def reference(dep, rgb, p):
    """Pure-JAX reference of the PyTorch forward (for verification only)."""
    out = jnp.concatenate([dep, rgb], axis=1)                  # (N, 2C, H, W)
    pooled_max = jnp.max(out, axis=(2, 3))                     # (N, 2C)
    pooled_avg = jnp.mean(out, axis=(2, 3))

    def mlp(x, w1, b1, w2, b2):
        h = jnp.maximum(x @ w1.T + b1, 0.0)
        return h @ w2.T + b2

    ch = jax.nn.sigmoid(
        mlp(pooled_max, p["w1m"], p["b1m"], p["w2m"], p["b2m"]) +
        mlp(pooled_avg, p["w1a"], p["b1a"], p["w2a"], p["b2a"]))          # (N, C)

    sp_in = jnp.concatenate([jnp.mean(out, axis=1, keepdims=True),
                             jnp.max(out, axis=1, keepdims=True)], axis=1)  # (N,2,H,W)
    conv = jax.lax.conv_general_dilated(
        sp_in, p["w5"], window_strides=(1, 1), padding=((2, 2), (2, 2)),
        dimension_numbers=("NCHW", "OIHW", "NCHW")) + p["b5"].reshape(1, 1, 1, 1)
    sp_att = jax.nn.sigmoid(jnp.maximum(conv, 0.0))                         # (N,1,H,W)

    att = ch[:, :, None, None] * sp_att                                     # (N,C,H,W)
    return att * dep, att * rgb


if __name__ == "__main__":
    key = jax.random.PRNGKey(0)
    k_dep, k_rgb, k_par = jax.random.split(key, 3)

    N, C, H, W = 2, 4, 16, 16     # num_features = 4
    dep = jax.random.normal(k_dep, (N, C, H, W), jnp.float32)
    rgb = jax.random.normal(k_rgb, (N, C, H, W), jnp.float32)
    params = init_params(k_par, C)

    out_dep, out_rgb = cac_forward(dep, rgb, params)
    jax.block_until_ready((out_dep, out_rgb))

    ref_dep, ref_rgb = reference(dep, rgb, params)
    # Tolerance accounts for the approximate-reciprocal (EUP rcp) sigmoids.
    assert bool(jnp.allclose(out_dep, ref_dep, atol=5e-3, rtol=5e-3)), "dep mismatch"
    assert bool(jnp.allclose(out_rgb, ref_rgb, atol=5e-3, rtol=5e-3)), "rgb mismatch"

    print("KERNEL_OK")
</pallas_src>

<mosaic_0001>
module attributes {stable_mosaic.version = 11 : i64} {
  func.func @_cac_kernel(%arg0: i32, %arg1: memref<1x4x256xf32, #tpu.memory_space<vmem>>, %arg2: memref<1x4x256xf32, #tpu.memory_space<vmem>>, %arg3: memref<5x256xf32, #tpu.memory_space<vmem>>, %arg4: memref<5x256xf32, #tpu.memory_space<vmem>>, %arg5: memref<4x8xf32, #tpu.memory_space<vmem>>, %arg6: memref<4x8xf32, #tpu.memory_space<vmem>>, %arg7: memref<1x8xf32, #tpu.memory_space<vmem>>, %arg8: memref<4x8xf32, #tpu.memory_space<vmem>>, %arg9: memref<4x1xf32, #tpu.memory_space<vmem>>, %arg10: memref<4x8xf32, #tpu.memory_space<vmem>>, %arg11: memref<4x8xf32, #tpu.memory_space<vmem>>, %arg12: memref<1x8xf32, #tpu.memory_space<vmem>>, %arg13: memref<4x8xf32, #tpu.memory_space<vmem>>, %arg14: memref<4x1xf32, #tpu.memory_space<vmem>>, %arg15: memref<50xf32, #tpu.memory_space<smem>>, %arg16: memref<1xf32, #tpu.memory_space<smem>>, %arg17: memref<1x4x256xf32, #tpu.memory_space<vmem>>, %arg18: memref<1x4x256xf32, #tpu.memory_space<vmem>>) attributes {dimension_semantics = [#tpu.dimension_semantics<parallel>], iteration_bounds = array<i64: 2>, scalar_prefetch = 0 : i64, scratch_operands = 0 : i64, tpu.core_type = #tpu.core_type<tc>, window_params = [{transform_indices = @transform_0, window_bounds = array<i64: 1, 4, 256>}, {transform_indices = @transform_1, window_bounds = array<i64: 1, 4, 256>}, {pipeline_mode = #tpu.pipeline_mode<synchronous>, transform_indices = @transform_2, window_bounds = array<i64: 5, 256>}, {pipeline_mode = #tpu.pipeline_mode<synchronous>, transform_indices = @transform_3, window_bounds = array<i64: 5, 256>}, {pipeline_mode = #tpu.pipeline_mode<synchronous>, transform_indices = @transform_4, window_bounds = array<i64: 4, 8>}, {pipeline_mode = #tpu.pipeline_mode<synchronous>, transform_indices = @transform_5, window_bounds = array<i64: 4, 8>}, {pipeline_mode = #tpu.pipeline_mode<synchronous>, transform_indices = @transform_6, window_bounds = array<i64: 1, 8>}, {pipeline_mode = #tpu.pipeline_mode<synchronous>, transform_indices = @transform_7, window_bounds = array<i64: 4, 8>}, {pipeline_mode = #tpu.pipeline_mode<synchronous>, transform_indices = @transform_8, window_bounds = array<i64: 4, 1>}, {pipeline_mode = #tpu.pipeline_mode<synchronous>, transform_indices = @transform_9, window_bounds = array<i64: 4, 8>}, {pipeline_mode = #tpu.pipeline_mode<synchronous>, transform_indices = @transform_10, window_bounds = array<i64: 4, 8>}, {pipeline_mode = #tpu.pipeline_mode<synchronous>, transform_indices = @transform_11, window_bounds = array<i64: 1, 8>}, {pipeline_mode = #tpu.pipeline_mode<synchronous>, transform_indices = @transform_12, window_bounds = array<i64: 4, 8>}, {pipeline_mode = #tpu.pipeline_mode<synchronous>, transform_indices = @transform_13, window_bounds = array<i64: 4, 1>}, {transform_indices = @transform_14, window_bounds = array<i64: 50>}, {transform_indices = @transform_15, window_bounds = array<i64: 1>}, {transform_indices = @transform_16, window_bounds = array<i64: 1, 4, 256>}, {transform_indices = @transform_17, window_bounds = array<i64: 1, 4, 256>}]} {
    %c0 = arith.constant 0 : index
    %c0_0 = arith.constant 0 : index
    %0 = vector.load %arg5[%c0, %c0_0] : memref<4x8xf32, #tpu.memory_space<vmem>>, vector<4x8xf32>
    %c0_1 = arith.constant 0 : index
    %c0_2 = arith.constant 0 : index
    %1 = vector.load %arg6[%c0_1, %c0_2] : memref<4x8xf32, #tpu.memory_space<vmem>>, vector<4x8xf32>
    %c0_3 = arith.constant 0 : index
    %c0_4 = arith.constant 0 : index
    %2 = vector.load %arg7[%c0_3, %c0_4] : memref<1x8xf32, #tpu.memory_space<vmem>>, vector<1x8xf32>
    %c0_5 = arith.constant 0 : index
    %c0_6 = arith.constant 0 : index
    %3 = vector.load %arg8[%c0_5, %c0_6] : memref<4x8xf32, #tpu.memory_space<vmem>>, vector<4x8xf32>
    %c0_7 = arith.constant 0 : index
    %c0_8 = arith.constant 0 : index
    %4 = vector.load %arg9[%c0_7, %c0_8] : memref<4x1xf32, #tpu.memory_space<vmem>>, vector<4x1xf32>
    %c0_9 = arith.constant 0 : index
    %c0_10 = arith.constant 0 : index
    %5 = vector.load %arg10[%c0_9, %c0_10] : memref<4x8xf32, #tpu.memory_space<vmem>>, vector<4x8xf32>
    %c0_11 = arith.constant 0 : index
    %c0_12 = arith.constant 0 : index
    %6 = vector.load %arg11[%c0_11, %c0_12] : memref<4x8xf32, #tpu.memory_space<vmem>>, vector<4x8xf32>
    %c0_13 = arith.constant 0 : index
    %c0_14 = arith.constant 0 : index
    %7 = vector.load %arg12[%c0_13, %c0_14] : memref<1x8xf32, #tpu.memory_space<vmem>>, vector<1x8xf32>
    %c0_15 = arith.constant 0 : index
    %c0_16 = arith.constant 0 : index
    %8 = vector.load %arg13[%c0_15, %c0_16] : memref<4x8xf32, #tpu.memory_space<vmem>>, vector<4x8xf32>
    %c0_17 = arith.constant 0 : index
    %c0_18 = arith.constant 0 : index
    %9 = vector.load %arg14[%c0_17, %c0_18] : memref<4x1xf32, #tpu.memory_space<vmem>>, vector<4x1xf32>
    %c0_19 = arith.constant 0 : index
    %10 = memref.load %arg16[%c0_19] : memref<1xf32, #tpu.memory_space<smem>>
    %c0_20 = arith.constant 0 : index
    %c0_21 = arith.constant 0 : index
    %c0_22 = arith.constant 0 : index
    %11 = vector.load %arg1[%c0_20, %c0_21, %c0_22] : memref<1x4x256xf32, #tpu.memory_space<vmem>>, vector<1x4x256xf32>
    %12 = vector.shape_cast %11 : vector<1x4x256xf32> to vector<4x256xf32>
    %c0_23 = arith.constant 0 : index
    %c0_24 = arith.constant 0 : index
    %c0_25 = arith.constant 0 : index
    %13 = vector.load %arg2[%c0_23, %c0_24, %c0_25] : memref<1x4x256xf32, #tpu.memory_space<vmem>>, vector<1x4x256xf32>
    %14 = vector.shape_cast %13 : vector<1x4x256xf32> to vector<4x256xf32>
    %cst = arith.constant dense<0xFF800000> : vector<4xf32>
    %15 = vector.multi_reduction <maximumf>, %12, %cst [1] : vector<4x256xf32> to vector<4xf32>
    %16 = vector.shape_cast %15 : vector<4xf32> to vector<4x1xf32>
    %cst_26 = arith.constant dense<0xFF800000> : vector<4xf32>
    %17 = vector.multi_reduction <maximumf>, %14, %cst_26 [1] : vector<4x256xf32> to vector<4xf32>
    %18 = vector.shape_cast %17 : vector<4xf32> to vector<4x1xf32>
    %cst_27 = arith.constant dense<0.000000e+00> : vector<4xf32>
    %19 = vector.multi_reduction <add>, %12, %cst_27 [1] : vector<4x256xf32> to vector<4xf32>
    %20 = vector.shape_cast %19 : vector<4xf32> to vector<4x1xf32>
    %cst_28 = arith.constant 3.906250e-03 : f32
    %21 = vector.broadcast %cst_28 : f32 to vector<4x1xf32>
    %22 = arith.mulf %20, %21 : vector<4x1xf32>
    %cst_29 = arith.constant dense<0.000000e+00> : vector<4xf32>
    %23 = vector.multi_reduction <add>, %14, %cst_29 [1] : vector<4x256xf32> to vector<4xf32>
    %24 = vector.shape_cast %23 : vector<4xf32> to vector<4x1xf32>
    %cst_30 = arith.constant 3.906250e-03 : f32
    %25 = vector.broadcast %cst_30 : f32 to vector<4x1xf32>
    %26 = arith.mulf %24, %25 : vector<4x1xf32>
    %27 = vector.broadcast %16 : vector<4x1xf32> to vector<4x8xf32>
    %28 = arith.mulf %0, %27 : vector<4x8xf32>
    %cst_31 = arith.constant dense<0.000000e+00> : vector<8xf32>
    %29 = vector.multi_reduction <add>, %28, %cst_31 [0] : vector<4x8xf32> to vector<8xf32>
    %30 = vector.shape_cast %29 : vector<8xf32> to vector<1x8xf32>
    %31 = vector.broadcast %18 : vector<4x1xf32> to vector<4x8xf32>
    %32 = arith.mulf %1, %31 : vector<4x8xf32>
    %cst_32 = arith.constant dense<0.000000e+00> : vector<8xf32>
    %33 = vector.multi_reduction <add>, %32, %cst_32 [0] : vector<4x8xf32> to vector<8xf32>
    %34 = vector.shape_cast %33 : vector<8xf32> to vector<1x8xf32>
    %35 = arith.addf %30, %34 : vector<1x8xf32>
    %36 = arith.addf %35, %2 : vector<1x8xf32>
    %cst_33 = arith.constant 0.000000e+00 : f32
    %37 = vector.broadcast %cst_33 : f32 to vector<1x8xf32>
    %38 = arith.maximumf %36, %37 : vector<1x8xf32>
    %39 = vector.broadcast %38 : vector<1x8xf32> to vector<4x8xf32>
    %40 = arith.mulf %3, %39 : vector<4x8xf32>
    %cst_34 = arith.constant dense<0.000000e+00> : vector<4xf32>
    %41 = vector.multi_reduction <add>, %40, %cst_34 [1] : vector<4x8xf32> to vector<4xf32>
    %42 = vector.shape_cast %41 : vector<4xf32> to vector<4x1xf32>
    %43 = arith.addf %42, %4 : vector<4x1xf32>
    %44 = vector.broadcast %22 : vector<4x1xf32> to vector<4x8xf32>
    %45 = arith.mulf %5, %44 : vector<4x8xf32>
    %cst_35 = arith.constant dense<0.000000e+00> : vector<8xf32>
    %46 = vector.multi_reduction <add>, %45, %cst_35 [0] : vector<4x8xf32> to vector<8xf32>
    %47 = vector.shape_cast %46 : vector<8xf32> to vector<1x8xf32>
    %48 = vector.broadcast %26 : vector<4x1xf32> to vector<4x8xf32>
    %49 = arith.mulf %6, %48 : vector<4x8xf32>
    %cst_36 = arith.constant dense<0.000000e+00> : vector<8xf32>
    %50 = vector.multi_reduction <add>, %49, %cst_36 [0] : vector<4x8xf32> to vector<8xf32>
    %51 = vector.shape_cast %50 : vector<8xf32> to vector<1x8xf32>
    %52 = arith.addf %47, %51 : vector<1x8xf32>
    %53 = arith.addf %52, %7 : vector<1x8xf32>
    %cst_37 = arith.constant 0.000000e+00 : f32
    %54 = vector.broadcast %cst_37 : f32 to vector<1x8xf32>
    %55 = arith.maximumf %53, %54 : vector<1x8xf32>
    %56 = vector.broadcast %55 : vector<1x8xf32> to vector<4x8xf32>
    %57 = arith.mulf %8, %56 : vector<4x8xf32>
    %cst_38 = arith.constant dense<0.000000e+00> : vector<4xf32>
    %58 = vector.multi_reduction <add>, %57, %cst_38 [1] : vector<4x8xf32> to vector<4xf32>
    %59 = vector.shape_cast %58 : vector<4xf32> to vector<4x1xf32>
    %60 = arith.addf %59, %9 : vector<4x1xf32>
    %61 = arith.addf %43, %60 : vector<4x1xf32>
    %cst_39 = arith.constant 0.000000e+00 : f32
    %62 = vector.broadcast %cst_39 : f32 to vector<4x1xf32>
    %63 = arith.subf %62, %61 : vector<4x1xf32>
    %64 = math.exp %63 : vector<4x1xf32>
    %cst_40 = arith.constant 1.000000e+00 : f32
    %65 = vector.broadcast %cst_40 : f32 to vector<4x1xf32>
    %66 = arith.addf %65, %64 : vector<4x1xf32>
    %67 = tpu.reciprocal %66 {approx = true} : vector<4x1xf32> -> vector<4x1xf32>
    %cst_41 = arith.constant dense<0.000000e+00> : vector<256xf32>
    %68 = vector.multi_reduction <add>, %12, %cst_41 [0] : vector<4x256xf32> to vector<256xf32>
    %69 = vector.shape_cast %68 : vector<256xf32> to vector<1x256xf32>
    %cst_42 = arith.constant dense<0.000000e+00> : vector<256xf32>
    %70 = vector.multi_reduction <add>, %14, %cst_42 [0] : vector<4x256xf32> to vector<256xf32>
    %71 = vector.shape_cast %70 : vector<256xf32> to vector<1x256xf32>
    %72 = arith.addf %69, %71 : vector<1x256xf32>
    %cst_43 = arith.constant 1.250000e-01 : f32
    %73 = vector.broadcast %cst_43 : f32 to vector<1x256xf32>
    %74 = arith.mulf %72, %73 : vector<1x256xf32>
    %cst_44 = arith.constant dense<0xFF800000> : vector<256xf32>
    %75 = vector.multi_reduction <maximumf>, %12, %cst_44 [0] : vector<4x256xf32> to vector<256xf32>
    %76 = vector.shape_cast %75 : vector<256xf32> to vector<1x256xf32>
    %cst_45 = arith.constant dense<0xFF800000> : vector<256xf32>
    %77 = vector.multi_reduction <maximumf>, %14, %cst_45 [0] : vector<4x256xf32> to vector<256xf32>
    %78 = vector.shape_cast %77 : vector<256xf32> to vector<1x256xf32>
    %79 = arith.maximumf %76, %78 : vector<1x256xf32>
    %cst_46 = arith.constant 0.000000e+00 : f32
    %80 = vector.broadcast %cst_46 : f32 to vector<1x256xf32>
    %c0_47 = arith.constant 0 : index
    %c0_48 = arith.constant 0 : index
    %81 = vector.load %arg4[%c0_47, %c0_48] : memref<5x256xf32, #tpu.memory_space<vmem>>, vector<1x256xf32>
    %c34_i32 = arith.constant 34 : i32
    %82 = tpu.dynamic_rotate %74 by %c34_i32 dim 1 : vector<1x256xf32>, i32 -> vector<1x256xf32>
    %c34_i32_49 = arith.constant 34 : i32
    %83 = tpu.dynamic_rotate %79 by %c34_i32_49 dim 1 : vector<1x256xf32>, i32 -> vector<1x256xf32>
    %c0_50 = arith.constant 0 : index
    %84 = memref.load %arg15[%c0_50] : memref<50xf32, #tpu.memory_space<smem>>
    %c25 = arith.constant 25 : index
    %85 = memref.load %arg15[%c25] : memref<50xf32, #tpu.memory_space<smem>>
    %c0_51 = arith.constant 0 : index
    %c0_52 = arith.constant 0 : index
    %86 = vector.load %arg3[%c0_51, %c0_52] : memref<5x256xf32, #tpu.memory_space<vmem>>, vector<1x256xf32>
    %87 = vector.broadcast %84 : f32 to vector<1x256xf32>
    %88 = arith.mulf %87, %82 : vector<1x256xf32>
    %89 = vector.broadcast %85 : f32 to vector<1x256xf32>
    %90 = arith.mulf %89, %83 : vector<1x256xf32>
    %91 = arith.addf %88, %90 : vector<1x256xf32>
    %92 = arith.mulf %86, %81 : vector<1x256xf32>
    %93 = arith.mulf %91, %92 : vector<1x256xf32>
    %94 = arith.addf %80, %93 : vector<1x256xf32>
    %c33_i32 = arith.constant 33 : i32
    %95 = tpu.dynamic_rotate %74 by %c33_i32 dim 1 : vector<1x256xf32>, i32 -> vector<1x256xf32>
    %c33_i32_53 = arith.constant 33 : i32
    %96 = tpu.dynamic_rotate %79 by %c33_i32_53 dim 1 : vector<1x256xf32>, i32 -> vector<1x256xf32>
    %c1 = arith.constant 1 : index
    %97 = memref.load %arg15[%c1] : memref<50xf32, #tpu.memory_space<smem>>
    %c26 = arith.constant 26 : index
    %98 = memref.load %arg15[%c26] : memref<50xf32, #tpu.memory_space<smem>>
    %c1_54 = arith.constant 1 : index
    %c0_55 = arith.constant 0 : index
    %99 = vector.load %arg3[%c1_54, %c0_55] : memref<5x256xf32, #tpu.memory_space<vmem>>, vector<1x256xf32>
    %100 = vector.broadcast %97 : f32 to vector<1x256xf32>
    %101 = arith.mulf %100, %95 : vector<1x256xf32>
    %102 = vector.broadcast %98 : f32 to vector<1x256xf32>
    %103 = arith.mulf %102, %96 : vector<1x256xf32>
    %104 = arith.addf %101, %103 : vector<1x256xf32>
    %105 = arith.mulf %99, %81 : vector<1x256xf32>
    %106 = arith.mulf %104, %105 : vector<1x256xf32>
    %107 = arith.addf %94, %106 : vector<1x256xf32>
    %c32_i32 = arith.constant 32 : i32
    %108 = tpu.dynamic_rotate %74 by %c32_i32 dim 1 : vector<1x256xf32>, i32 -> vector<1x256xf32>
    %c32_i32_56 = arith.constant 32 : i32
    %109 = tpu.dynamic_rotate %79 by %c32_i32_56 dim 1 : vector<1x256xf32>, i32 -> vector<1x256xf32>
    %c2 = arith.constant 2 : index
    %110 = memref.load %arg15[%c2] : memref<50xf32, #tpu.memory_space<smem>>
    %c27 = arith.constant 27 : index
    %111 = memref.load %arg15[%c27] : memref<50xf32, #tpu.memory_space<smem>>
    %c2_57 = arith.constant 2 : index
    %c0_58 = arith.constant 0 : index
    %112 = vector.load %arg3[%c2_57, %c0_58] : memref<5x256xf32, #tpu.memory_space<vmem>>, vector<1x256xf32>
    %113 = vector.broadcast %110 : f32 to vector<1x256xf32>
    %114 = arith.mulf %113, %108 : vector<1x256xf32>
    %115 = vector.broadcast %111 : f32 to vector<1x256xf32>
    %116 = arith.mulf %115, %109 : vector<1x256xf32>
    %117 = arith.addf %114, %116 : vector<1x256xf32>
    %118 = arith.mulf %112, %81 : vector<1x256xf32>
    %119 = arith.mulf %117, %118 : vector<1x256xf32>
    %120 = arith.addf %107, %119 : vector<1x256xf32>
    %c31_i32 = arith.constant 31 : i32
    %121 = tpu.dynamic_rotate %74 by %c31_i32 dim 1 : vector<1x256xf32>, i32 -> vector<1x256xf32>
    %c31_i32_59 = arith.constant 31 : i32
    %122 = tpu.dynamic_rotate %79 by %c31_i32_59 dim 1 : vector<1x256xf32>, i32 -> vector<1x256xf32>
    %c3 = arith.constant 3 : index
    %123 = memref.load %arg15[%c3] : memref<50xf32, #tpu.memory_space<smem>>
    %c28 = arith.constant 28 : index
    %124 = memref.load %arg15[%c28] : memref<50xf32, #tpu.memory_space<smem>>
    %c3_60 = arith.constant 3 : index
    %c0_61 = arith.constant 0 : index
    %125 = vector.load %arg3[%c3_60, %c0_61] : memref<5x256xf32, #tpu.memory_space<vmem>>, vector<1x256xf32>
    %126 = vector.broadcast %123 : f32 to vector<1x256xf32>
    %127 = arith.mulf %126, %121 : vector<1x256xf32>
    %128 = vector.broadcast %124 : f32 to vector<1x256xf32>
    %129 = arith.mulf %128, %122 : vector<1x256xf32>
    %130 = arith.addf %127, %129 : vector<1x256xf32>
    %131 = arith.mulf %125, %81 : vector<1x256xf32>
    %132 = arith.mulf %130, %131 : vector<1x256xf32>
    %133 = arith.addf %120, %132 : vector<1x256xf32>
    %c30_i32 = arith.constant 30 : i32
    %134 = tpu.dynamic_rotate %74 by %c30_i32 dim 1 : vector<1x256xf32>, i32 -> vector<1x256xf32>
    %c30_i32_62 = arith.constant 30 : i32
    %135 = tpu.dynamic_rotate %79 by %c30_i32_62 dim 1 : vector<1x256xf32>, i32 -> vector<1x256xf32>
    %c4 = arith.constant 4 : index
    %136 = memref.load %arg15[%c4] : memref<50xf32, #tpu.memory_space<smem>>
    %c29 = arith.constant 29 : index
    %137 = memref.load %arg15[%c29] : memref<50xf32, #tpu.memory_space<smem>>
    %c4_63 = arith.constant 4 : index
    %c0_64 = arith.constant 0 : index
    %138 = vector.load %arg3[%c4_63, %c0_64] : memref<5x256xf32, #tpu.memory_space<vmem>>, vector<1x256xf32>
    %139 = vector.broadcast %136 : f32 to vector<1x256xf32>
    %140 = arith.mulf %139, %134 : vector<1x256xf32>
    %141 = vector.broadcast %137 : f32 to vector<1x256xf32>
    %142 = arith.mulf %141, %135 : vector<1x256xf32>
    %143 = arith.addf %140, %142 : vector<1x256xf32>
    %144 = arith.mulf %138, %81 : vector<1x256xf32>
    %145 = arith.mulf %143, %144 : vector<1x256xf32>
    %146 = arith.addf %133, %145 : vector<1x256xf32>
    %c1_65 = arith.constant 1 : index
    %c0_66 = arith.constant 0 : index
    %147 = vector.load %arg4[%c1_65, %c0_66] : memref<5x256xf32, #tpu.memory_space<vmem>>, vector<1x256xf32>
    %c18_i32 = arith.constant 18 : i32
    %148 = tpu.dynamic_rotate %74 by %c18_i32 dim 1 : vector<1x256xf32>, i32 -> vector<1x256xf32>
    %c18_i32_67 = arith.constant 18 : i32
    %149 = tpu.dynamic_rotate %79 by %c18_i32_67 dim 1 : vector<1x256xf32>, i32 -> vector<1x256xf32>
    %c5 = arith.constant 5 : index
    %150 = memref.load %arg15[%c5] : memref<50xf32, #tpu.memory_space<smem>>
    %c30 = arith.constant 30 : index
    %151 = memref.load %arg15[%c30] : memref<50xf32, #tpu.memory_space<smem>>
    %c0_68 = arith.constant 0 : index
    %c0_69 = arith.constant 0 : index
    %152 = vector.load %arg3[%c0_68, %c0_69] : memref<5x256xf32, #tpu.memory_space<vmem>>, vector<1x256xf32>
    %153 = vector.broadcast %150 : f32 to vector<1x256xf32>
    %154 = arith.mulf %153, %148 : vector<1x256xf32>
    %155 = vector.broadcast %151 : f32 to vector<1x256xf32>
    %156 = arith.mulf %155, %149 : vector<1x256xf32>
    %157 = arith.addf %154, %156 : vector<1x256xf32>
    %158 = arith.mulf %152, %147 : vector<1x256xf32>
    %159 = arith.mulf %157, %158 : vector<1x256xf32>
    %160 = arith.addf %146, %159 : vector<1x256xf32>
    %c17_i32 = arith.constant 17 : i32
    %161 = tpu.dynamic_rotate %74 by %c17_i32 dim 1 : vector<1x256xf32>, i32 -> vector<1x256xf32>
    %c17_i32_70 = arith.constant 17 : i32
    %162 = tpu.dynamic_rotate %79 by %c17_i32_70 dim 1 : vector<1x256xf32>, i32 -> vector<1x256xf32>
    %c6 = arith.constant 6 : index
    %163 = memref.load %arg15[%c6] : memref<50xf32, #tpu.memory_space<smem>>
    %c31 = arith.constant 31 : index
    %164 = memref.load %arg15[%c31] : memref<50xf32, #tpu.memory_space<smem>>
    %c1_71 = arith.constant 1 : index
    %c0_72 = arith.constant 0 : index
    %165 = vector.load %arg3[%c1_71, %c0_72] : memref<5x256xf32, #tpu.memory_space<vmem>>, vector<1x256xf32>
    %166 = vector.broadcast %163 : f32 to vector<1x256xf32>
    %167 = arith.mulf %166, %161 : vector<1x256xf32>
    %168 = vector.broadcast %164 : f32 to vector<1x256xf32>
    %169 = arith.mulf %168, %162 : vector<1x256xf32>
    %170 = arith.addf %167, %169 : vector<1x256xf32>
    %171 = arith.mulf %165, %147 : vector<1x256xf32>
    %172 = arith.mulf %170, %171 : vector<1x256xf32>
    %173 = arith.addf %160, %172 : vector<1x256xf32>
    %c16_i32 = arith.constant 16 : i32
    %174 = tpu.dynamic_rotate %74 by %c16_i32 dim 1 : vector<1x256xf32>, i32 -> vector<1x256xf32>
    %c16_i32_73 = arith.constant 16 : i32
    %175 = tpu.dynamic_rotate %79 by %c16_i32_73 dim 1 : vector<1x256xf32>, i32 -> vector<1x256xf32>
    %c7 = arith.constant 7 : index
    %176 = memref.load %arg15[%c7] : memref<50xf32, #tpu.memory_space<smem>>
    %c32 = arith.constant 32 : index
    %177 = memref.load %arg15[%c32] : memref<50xf32, #tpu.memory_space<smem>>
    %c2_74 = arith.constant 2 : index
    %c0_75 = arith.constant 0 : index
    %178 = vector.load %arg3[%c2_74, %c0_75] : memref<5x256xf32, #tpu.memory_space<vmem>>, vector<1x256xf32>
    %179 = vector.broadcast %176 : f32 to vector<1x256xf32>
    %180 = arith.mulf %179, %174 : vector<1x256xf32>
    %181 = vector.broadcast %177 : f32 to vector<1x256xf32>
    %182 = arith.mulf %181, %175 : vector<1x256xf32>
    %183 = arith.addf %180, %182 : vector<1x256xf32>
    %184 = arith.mulf %178, %147 : vector<1x256xf32>
    %185 = arith.mulf %183, %184 : vector<1x256xf32>
    %186 = arith.addf %173, %185 : vector<1x256xf32>
    %c15_i32 = arith.constant 15 : i32
    %187 = tpu.dynamic_rotate %74 by %c15_i32 dim 1 : vector<1x256xf32>, i32 -> vector<1x256xf32>
    %c15_i32_76 = arith.constant 15 : i32
    %188 = tpu.dynamic_rotate %79 by %c15_i32_76 dim 1 : vector<1x256xf32>, i32 -> vector<1x256xf32>
    %c8 = arith.constant 8 : index
    %189 = memref.load %arg15[%c8] : memref<50xf32, #tpu.memory_space<smem>>
    %c33 = arith.constant 33 : index
    %190 = memref.load %arg15[%c33] : memref<50xf32, #tpu.memory_space<smem>>
    %c3_77 = arith.constant 3 : index
    %c0_78 = arith.constant 0 : index
    %191 = vector.load %arg3[%c3_77, %c0_78] : memref<5x256xf32, #tpu.memory_space<vmem>>, vector<1x256xf32>
    %192 = vector.broadcast %189 : f32 to vector<1x256xf32>
    %193 = arith.mulf %192, %187 : vector<1x256xf32>
    %194 = vector.broadcast %190 : f32 to vector<1x256xf32>
    %195 = arith.mulf %194, %188 : vector<1x256xf32>
    %196 = arith.addf %193, %195 : vector<1x256xf32>
    %197 = arith.mulf %191, %147 : vector<1x256xf32>
    %198 = arith.mulf %196, %197 : vector<1x256xf32>
    %199 = arith.addf %186, %198 : vector<1x256xf32>
    %c14_i32 = arith.constant 14 : i32
    %200 = tpu.dynamic_rotate %74 by %c14_i32 dim 1 : vector<1x256xf32>, i32 -> vector<1x256xf32>
    %c14_i32_79 = arith.constant 14 : i32
    %201 = tpu.dynamic_rotate %79 by %c14_i32_79 dim 1 : vector<1x256xf32>, i32 -> vector<1x256xf32>
    %c9 = arith.constant 9 : index
    %202 = memref.load %arg15[%c9] : memref<50xf32, #tpu.memory_space<smem>>
    %c34 = arith.constant 34 : index
    %203 = memref.load %arg15[%c34] : memref<50xf32, #tpu.memory_space<smem>>
    %c4_80 = arith.constant 4 : index
    %c0_81 = arith.constant 0 : index
    %204 = vector.load %arg3[%c4_80, %c0_81] : memref<5x256xf32, #tpu.memory_space<vmem>>, vector<1x256xf32>
    %205 = vector.broadcast %202 : f32 to vector<1x256xf32>
    %206 = arith.mulf %205, %200 : vector<1x256xf32>
    %207 = vector.broadcast %203 : f32 to vector<1x256xf32>
    %208 = arith.mulf %207, %201 : vector<1x256xf32>
    %209 = arith.addf %206, %208 : vector<1x256xf32>
    %210 = arith.mulf %204, %147 : vector<1x256xf32>
    %211 = arith.mulf %209, %210 : vector<1x256xf32>
    %212 = arith.addf %199, %211 : vector<1x256xf32>
    %c2_82 = arith.constant 2 : index
    %c0_83 = arith.constant 0 : index
    %213 = vector.load %arg4[%c2_82, %c0_83] : memref<5x256xf32, #tpu.memory_space<vmem>>, vector<1x256xf32>
    %c2_i32 = arith.constant 2 : i32
    %214 = tpu.dynamic_rotate %74 by %c2_i32 dim 1 : vector<1x256xf32>, i32 -> vector<1x256xf32>
    %c2_i32_84 = arith.constant 2 : i32
    %215 = tpu.dynamic_rotate %79 by %c2_i32_84 dim 1 : vector<1x256xf32>, i32 -> vector<1x256xf32>
    %c10 = arith.constant 10 : index
    %216 = memref.load %arg15[%c10] : memref<50xf32, #tpu.memory_space<smem>>
    %c35 = arith.constant 35 : index
    %217 = memref.load %arg15[%c35] : memref<50xf32, #tpu.memory_space<smem>>
    %c0_85 = arith.constant 0 : index
    %c0_86 = arith.constant 0 : index
    %218 = vector.load %arg3[%c0_85, %c0_86] : memref<5x256xf32, #tpu.memory_space<vmem>>, vector<1x256xf32>
    %219 = vector.broadcast %216 : f32 to vector<1x256xf32>
    %220 = arith.mulf %219, %214 : vector<1x256xf32>
    %221 = vector.broadcast %217 : f32 to vector<1x256xf32>
    %222 = arith.mulf %221, %215 : vector<1x256xf32>
    %223 = arith.addf %220, %222 : vector<1x256xf32>
    %224 = arith.mulf %218, %213 : vector<1x256xf32>
    %225 = arith.mulf %223, %224 : vector<1x256xf32>
    %226 = arith.addf %212, %225 : vector<1x256xf32>
    %c1_i32 = arith.constant 1 : i32
    %227 = tpu.dynamic_rotate %74 by %c1_i32 dim 1 : vector<1x256xf32>, i32 -> vector<1x256xf32>
    %c1_i32_87 = arith.constant 1 : i32
    %228 = tpu.dynamic_rotate %79 by %c1_i32_87 dim 1 : vector<1x256xf32>, i32 -> vector<1x256xf32>
    %c11 = arith.constant 11 : index
    %229 = memref.load %arg15[%c11] : memref<50xf32, #tpu.memory_space<smem>>
    %c36 = arith.constant 36 : index
    %230 = memref.load %arg15[%c36] : memref<50xf32, #tpu.memory_space<smem>>
    %c1_88 = arith.constant 1 : index
    %c0_89 = arith.constant 0 : index
    %231 = vector.load %arg3[%c1_88, %c0_89] : memref<5x256xf32, #tpu.memory_space<vmem>>, vector<1x256xf32>
    %232 = vector.broadcast %229 : f32 to vector<1x256xf32>
    %233 = arith.mulf %232, %227 : vector<1x256xf32>
    %234 = vector.broadcast %230 : f32 to vector<1x256xf32>
    %235 = arith.mulf %234, %228 : vector<1x256xf32>
    %236 = arith.addf %233, %235 : vector<1x256xf32>
    %237 = arith.mulf %231, %213 : vector<1x256xf32>
    %238 = arith.mulf %236, %237 : vector<1x256xf32>
    %239 = arith.addf %226, %238 : vector<1x256xf32>
    %c12 = arith.constant 12 : index
    %240 = memref.load %arg15[%c12] : memref<50xf32, #tpu.memory_space<smem>>
    %c37 = arith.constant 37 : index
    %241 = memref.load %arg15[%c37] : memref<50xf32, #tpu.memory_space<smem>>
    %c2_90 = arith.constant 2 : index
    %c0_91 = arith.constant 0 : index
    %242 = vector.load %arg3[%c2_90, %c0_91] : memref<5x256xf32, #tpu.memory_space<vmem>>, vector<1x256xf32>
    %243 = vector.broadcast %240 : f32 to vector<1x256xf32>
    %244 = arith.mulf %243, %74 : vector<1x256xf32>
    %245 = vector.broadcast %241 : f32 to vector<1x256xf32>
    %246 = arith.mulf %245, %79 : vector<1x256xf32>
    %247 = arith.addf %244, %246 : vector<1x256xf32>
    %248 = arith.mulf %242, %213 : vector<1x256xf32>
    %249 = arith.mulf %247, %248 : vector<1x256xf32>
    %250 = arith.addf %239, %249 : vector<1x256xf32>
    %c255_i32 = arith.constant 255 : i32
    %251 = tpu.dynamic_rotate %74 by %c255_i32 dim 1 : vector<1x256xf32>, i32 -> vector<1x256xf32>
    %c255_i32_92 = arith.constant 255 : i32
    %252 = tpu.dynamic_rotate %79 by %c255_i32_92 dim 1 : vector<1x256xf32>, i32 -> vector<1x256xf32>
    %c13 = arith.constant 13 : index
    %253 = memref.load %arg15[%c13] : memref<50xf32, #tpu.memory_space<smem>>
    %c38 = arith.constant 38 : index
    %254 = memref.load %arg15[%c38] : memref<50xf32, #tpu.memory_space<smem>>
    %c3_93 = arith.constant 3 : index
    %c0_94 = arith.constant 0 : index
    %255 = vector.load %arg3[%c3_93, %c0_94] : memref<5x256xf32, #tpu.memory_space<vmem>>, vector<1x256xf32>
    %256 = vector.broadcast %253 : f32 to vector<1x256xf32>
    %257 = arith.mulf %256, %251 : vector<1x256xf32>
    %258 = vector.broadcast %254 : f32 to vector<1x256xf32>
    %259 = arith.mulf %258, %252 : vector<1x256xf32>
    %260 = arith.addf %257, %259 : vector<1x256xf32>
    %261 = arith.mulf %255, %213 : vector<1x256xf32>
    %262 = arith.mulf %260, %261 : vector<1x256xf32>
    %263 = arith.addf %250, %262 : vector<1x256xf32>
    %c254_i32 = arith.constant 254 : i32
    %264 = tpu.dynamic_rotate %74 by %c254_i32 dim 1 : vector<1x256xf32>, i32 -> vector<1x256xf32>
    %c254_i32_95 = arith.constant 254 : i32
    %265 = tpu.dynamic_rotate %79 by %c254_i32_95 dim 1 : vector<1x256xf32>, i32 -> vector<1x256xf32>
    %c14 = arith.constant 14 : index
    %266 = memref.load %arg15[%c14] : memref<50xf32, #tpu.memory_space<smem>>
    %c39 = arith.constant 39 : index
    %267 = memref.load %arg15[%c39] : memref<50xf32, #tpu.memory_space<smem>>
    %c4_96 = arith.constant 4 : index
    %c0_97 = arith.constant 0 : index
    %268 = vector.load %arg3[%c4_96, %c0_97] : memref<5x256xf32, #tpu.memory_space<vmem>>, vector<1x256xf32>
    %269 = vector.broadcast %266 : f32 to vector<1x256xf32>
    %270 = arith.mulf %269, %264 : vector<1x256xf32>
    %271 = vector.broadcast %267 : f32 to vector<1x256xf32>
    %272 = arith.mulf %271, %265 : vector<1x256xf32>
    %273 = arith.addf %270, %272 : vector<1x256xf32>
    %274 = arith.mulf %268, %213 : vector<1x256xf32>
    %275 = arith.mulf %273, %274 : vector<1x256xf32>
    %276 = arith.addf %263, %275 : vector<1x256xf32>
    %c3_98 = arith.constant 3 : index
    %c0_99 = arith.constant 0 : index
    %277 = vector.load %arg4[%c3_98, %c0_99] : memref<5x256xf32, #tpu.memory_space<vmem>>, vector<1x256xf32>
    %c242_i32 = arith.constant 242 : i32
    %278 = tpu.dynamic_rotate %74 by %c242_i32 dim 1 : vector<1x256xf32>, i32 -> vector<1x256xf32>
    %c242_i32_100 = arith.constant 242 : i32
    %279 = tpu.dynamic_rotate %79 by %c242_i32_100 dim 1 : vector<1x256xf32>, i32 -> vector<1x256xf32>
    %c15 = arith.constant 15 : index
    %280 = memref.load %arg15[%c15] : memref<50xf32, #tpu.memory_space<smem>>
    %c40 = arith.constant 40 : index
    %281 = memref.load %arg15[%c40] : memref<50xf32, #tpu.memory_space<smem>>
    %c0_101 = arith.constant 0 : index
    %c0_102 = arith.constant 0 : index
    %282 = vector.load %arg3[%c0_101, %c0_102] : memref<5x256xf32, #tpu.memory_space<vmem>>, vector<1x256xf32>
    %283 = vector.broadcast %280 : f32 to vector<1x256xf32>
    %284 = arith.mulf %283, %278 : vector<1x256xf32>
    %285 = vector.broadcast %281 : f32 to vector<1x256xf32>
    %286 = arith.mulf %285, %279 : vector<1x256xf32>
    %287 = arith.addf %284, %286 : vector<1x256xf32>
    %288 = arith.mulf %282, %277 : vector<1x256xf32>
    %289 = arith.mulf %287, %288 : vector<1x256xf32>
    %290 = arith.addf %276, %289 : vector<1x256xf32>
    %c241_i32 = arith.constant 241 : i32
    %291 = tpu.dynamic_rotate %74 by %c241_i32 dim 1 : vector<1x256xf32>, i32 -> vector<1x256xf32>
    %c241_i32_103 = arith.constant 241 : i32
    %292 = tpu.dynamic_rotate %79 by %c241_i32_103 dim 1 : vector<1x256xf32>, i32 -> vector<1x256xf32>
    %c16 = arith.constant 16 : index
    %293 = memref.load %arg15[%c16] : memref<50xf32, #tpu.memory_space<smem>>
    %c41 = arith.constant 41 : index
    %294 = memref.load %arg15[%c41] : memref<50xf32, #tpu.memory_space<smem>>
    %c1_104 = arith.constant 1 : index
    %c0_105 = arith.constant 0 : index
    %295 = vector.load %arg3[%c1_104, %c0_105] : memref<5x256xf32, #tpu.memory_space<vmem>>, vector<1x256xf32>
    %296 = vector.broadcast %293 : f32 to vector<1x256xf32>
    %297 = arith.mulf %296, %291 : vector<1x256xf32>
    %298 = vector.broadcast %294 : f32 to vector<1x256xf32>
    %299 = arith.mulf %298, %292 : vector<1x256xf32>
    %300 = arith.addf %297, %299 : vector<1x256xf32>
    %301 = arith.mulf %295, %277 : vector<1x256xf32>
    %302 = arith.mulf %300, %301 : vector<1x256xf32>
    %303 = arith.addf %290, %302 : vector<1x256xf32>
    %c240_i32 = arith.constant 240 : i32
    %304 = tpu.dynamic_rotate %74 by %c240_i32 dim 1 : vector<1x256xf32>, i32 -> vector<1x256xf32>
    %c240_i32_106 = arith.constant 240 : i32
    %305 = tpu.dynamic_rotate %79 by %c240_i32_106 dim 1 : vector<1x256xf32>, i32 -> vector<1x256xf32>
    %c17 = arith.constant 17 : index
    %306 = memref.load %arg15[%c17] : memref<50xf32, #tpu.memory_space<smem>>
    %c42 = arith.constant 42 : index
    %307 = memref.load %arg15[%c42] : memref<50xf32, #tpu.memory_space<smem>>
    %c2_107 = arith.constant 2 : index
    %c0_108 = arith.constant 0 : index
    %308 = vector.load %arg3[%c2_107, %c0_108] : memref<5x256xf32, #tpu.memory_space<vmem>>, vector<1x256xf32>
    %309 = vector.broadcast %306 : f32 to vector<1x256xf32>
    %310 = arith.mulf %309, %304 : vector<1x256xf32>
    %311 = vector.broadcast %307 : f32 to vector<1x256xf32>
    %312 = arith.mulf %311, %305 : vector<1x256xf32>
    %313 = arith.addf %310, %312 : vector<1x256xf32>
    %314 = arith.mulf %308, %277 : vector<1x256xf32>
    %315 = arith.mulf %313, %314 : vector<1x256xf32>
    %316 = arith.addf %303, %315 : vector<1x256xf32>
    %c239_i32 = arith.constant 239 : i32
    %317 = tpu.dynamic_rotate %74 by %c239_i32 dim 1 : vector<1x256xf32>, i32 -> vector<1x256xf32>
    %c239_i32_109 = arith.constant 239 : i32
    %318 = tpu.dynamic_rotate %79 by %c239_i32_109 dim 1 : vector<1x256xf32>, i32 -> vector<1x256xf32>
    %c18 = arith.constant 18 : index
    %319 = memref.load %arg15[%c18] : memref<50xf32, #tpu.memory_space<smem>>
    %c43 = arith.constant 43 : index
    %320 = memref.load %arg15[%c43] : memref<50xf32, #tpu.memory_space<smem>>
    %c3_110 = arith.constant 3 : index
    %c0_111 = arith.constant 0 : index
    %321 = vector.load %arg3[%c3_110, %c0_111] : memref<5x256xf32, #tpu.memory_space<vmem>>, vector<1x256xf32>
    %322 = vector.broadcast %319 : f32 to vector<1x256xf32>
    %323 = arith.mulf %322, %317 : vector<1x256xf32>
    %324 = vector.broadcast %320 : f32 to vector<1x256xf32>
    %325 = arith.mulf %324, %318 : vector<1x256xf32>
    %326 = arith.addf %323, %325 : vector<1x256xf32>
    %327 = arith.mulf %321, %277 : vector<1x256xf32>
    %328 = arith.mulf %326, %327 : vector<1x256xf32>
    %329 = arith.addf %316, %328 : vector<1x256xf32>
    %c238_i32 = arith.constant 238 : i32
    %330 = tpu.dynamic_rotate %74 by %c238_i32 dim 1 : vector<1x256xf32>, i32 -> vector<1x256xf32>
    %c238_i32_112 = arith.constant 238 : i32
    %331 = tpu.dynamic_rotate %79 by %c238_i32_112 dim 1 : vector<1x256xf32>, i32 -> vector<1x256xf32>
    %c19 = arith.constant 19 : index
    %332 = memref.load %arg15[%c19] : memref<50xf32, #tpu.memory_space<smem>>
    %c44 = arith.constant 44 : index
    %333 = memref.load %arg15[%c44] : memref<50xf32, #tpu.memory_space<smem>>
    %c4_113 = arith.constant 4 : index
    %c0_114 = arith.constant 0 : index
    %334 = vector.load %arg3[%c4_113, %c0_114] : memref<5x256xf32, #tpu.memory_space<vmem>>, vector<1x256xf32>
    %335 = vector.broadcast %332 : f32 to vector<1x256xf32>
    %336 = arith.mulf %335, %330 : vector<1x256xf32>
    %337 = vector.broadcast %333 : f32 to vector<1x256xf32>
    %338 = arith.mulf %337, %331 : vector<1x256xf32>
    %339 = arith.addf %336, %338 : vector<1x256xf32>
    %340 = arith.mulf %334, %277 : vector<1x256xf32>
    %341 = arith.mulf %339, %340 : vector<1x256xf32>
    %342 = arith.addf %329, %341 : vector<1x256xf32>
    %c4_115 = arith.constant 4 : index
    %c0_116 = arith.constant 0 : index
    %343 = vector.load %arg4[%c4_115, %c0_116] : memref<5x256xf32, #tpu.memory_space<vmem>>, vector<1x256xf32>
    %c226_i32 = arith.constant 226 : i32
    %344 = tpu.dynamic_rotate %74 by %c226_i32 dim 1 : vector<1x256xf32>, i32 -> vector<1x256xf32>
    %c226_i32_117 = arith.constant 226 : i32
    %345 = tpu.dynamic_rotate %79 by %c226_i32_117 dim 1 : vector<1x256xf32>, i32 -> vector<1x256xf32>
    %c20 = arith.constant 20 : index
    %346 = memref.load %arg15[%c20] : memref<50xf32, #tpu.memory_space<smem>>
    %c45 = arith.constant 45 : index
    %347 = memref.load %arg15[%c45] : memref<50xf32, #tpu.memory_space<smem>>
    %c0_118 = arith.constant 0 : index
    %c0_119 = arith.constant 0 : index
    %348 = vector.load %arg3[%c0_118, %c0_119] : memref<5x256xf32, #tpu.memory_space<vmem>>, vector<1x256xf32>
    %349 = vector.broadcast %346 : f32 to vector<1x256xf32>
    %350 = arith.mulf %349, %344 : vector<1x256xf32>
    %351 = vector.broadcast %347 : f32 to vector<1x256xf32>
    %352 = arith.mulf %351, %345 : vector<1x256xf32>
    %353 = arith.addf %350, %352 : vector<1x256xf32>
    %354 = arith.mulf %348, %343 : vector<1x256xf32>
    %355 = arith.mulf %353, %354 : vector<1x256xf32>
    %356 = arith.addf %342, %355 : vector<1x256xf32>
    %c225_i32 = arith.constant 225 : i32
    %357 = tpu.dynamic_rotate %74 by %c225_i32 dim 1 : vector<1x256xf32>, i32 -> vector<1x256xf32>
    %c225_i32_120 = arith.constant 225 : i32
    %358 = tpu.dynamic_rotate %79 by %c225_i32_120 dim 1 : vector<1x256xf32>, i32 -> vector<1x256xf32>
    %c21 = arith.constant 21 : index
    %359 = memref.load %arg15[%c21] : memref<50xf32, #tpu.memory_space<smem>>
    %c46 = arith.constant 46 : index
    %360 = memref.load %arg15[%c46] : memref<50xf32, #tpu.memory_space<smem>>
    %c1_121 = arith.constant 1 : index
    %c0_122 = arith.constant 0 : index
    %361 = vector.load %arg3[%c1_121, %c0_122] : memref<5x256xf32, #tpu.memory_space<vmem>>, vector<1x256xf32>
    %362 = vector.broadcast %359 : f32 to vector<1x256xf32>
    %363 = arith.mulf %362, %357 : vector<1x256xf32>
    %364 = vector.broadcast %360 : f32 to vector<1x256xf32>
    %365 = arith.mulf %364, %358 : vector<1x256xf32>
    %366 = arith.addf %363, %365 : vector<1x256xf32>
    %367 = arith.mulf %361, %343 : vector<1x256xf32>
    %368 = arith.mulf %366, %367 : vector<1x256xf32>
    %369 = arith.addf %356, %368 : vector<1x256xf32>
    %c224_i32 = arith.constant 224 : i32
    %370 = tpu.dynamic_rotate %74 by %c224_i32 dim 1 : vector<1x256xf32>, i32 -> vector<1x256xf32>
    %c224_i32_123 = arith.constant 224 : i32
    %371 = tpu.dynamic_rotate %79 by %c224_i32_123 dim 1 : vector<1x256xf32>, i32 -> vector<1x256xf32>
    %c22 = arith.constant 22 : index
    %372 = memref.load %arg15[%c22] : memref<50xf32, #tpu.memory_space<smem>>
    %c47 = arith.constant 47 : index
    %373 = memref.load %arg15[%c47] : memref<50xf32, #tpu.memory_space<smem>>
    %c2_124 = arith.constant 2 : index
    %c0_125 = arith.constant 0 : index
    %374 = vector.load %arg3[%c2_124, %c0_125] : memref<5x256xf32, #tpu.memory_space<vmem>>, vector<1x256xf32>
    %375 = vector.broadcast %372 : f32 to vector<1x256xf32>
    %376 = arith.mulf %375, %370 : vector<1x256xf32>
    %377 = vector.broadcast %373 : f32 to vector<1x256xf32>
    %378 = arith.mulf %377, %371 : vector<1x256xf32>
    %379 = arith.addf %376, %378 : vector<1x256xf32>
    %380 = arith.mulf %374, %343 : vector<1x256xf32>
    %381 = arith.mulf %379, %380 : vector<1x256xf32>
    %382 = arith.addf %369, %381 : vector<1x256xf32>
    %c223_i32 = arith.constant 223 : i32
    %383 = tpu.dynamic_rotate %74 by %c223_i32 dim 1 : vector<1x256xf32>, i32 -> vector<1x256xf32>
    %c223_i32_126 = arith.constant 223 : i32
    %384 = tpu.dynamic_rotate %79 by %c223_i32_126 dim 1 : vector<1x256xf32>, i32 -> vector<1x256xf32>
    %c23 = arith.constant 23 : index
    %385 = memref.load %arg15[%c23] : memref<50xf32, #tpu.memory_space<smem>>
    %c48 = arith.constant 48 : index
    %386 = memref.load %arg15[%c48] : memref<50xf32, #tpu.memory_space<smem>>
    %c3_127 = arith.constant 3 : index
    %c0_128 = arith.constant 0 : index
    %387 = vector.load %arg3[%c3_127, %c0_128] : memref<5x256xf32, #tpu.memory_space<vmem>>, vector<1x256xf32>
    %388 = vector.broadcast %385 : f32 to vector<1x256xf32>
    %389 = arith.mulf %388, %383 : vector<1x256xf32>
    %390 = vector.broadcast %386 : f32 to vector<1x256xf32>
    %391 = arith.mulf %390, %384 : vector<1x256xf32>
    %392 = arith.addf %389, %391 : vector<1x256xf32>
    %393 = arith.mulf %387, %343 : vector<1x256xf32>
    %394 = arith.mulf %392, %393 : vector<1x256xf32>
    %395 = arith.addf %382, %394 : vector<1x256xf32>
    %c222_i32 = arith.constant 222 : i32
    %396 = tpu.dynamic_rotate %74 by %c222_i32 dim 1 : vector<1x256xf32>, i32 -> vector<1x256xf32>
    %c222_i32_129 = arith.constant 222 : i32
    %397 = tpu.dynamic_rotate %79 by %c222_i32_129 dim 1 : vector<1x256xf32>, i32 -> vector<1x256xf32>
    %c24 = arith.constant 24 : index
    %398 = memref.load %arg15[%c24] : memref<50xf32, #tpu.memory_space<smem>>
    %c49 = arith.constant 49 : index
    %399 = memref.load %arg15[%c49] : memref<50xf32, #tpu.memory_space<smem>>
    %c4_130 = arith.constant 4 : index
    %c0_131 = arith.constant 0 : index
    %400 = vector.load %arg3[%c4_130, %c0_131] : memref<5x256xf32, #tpu.memory_space<vmem>>, vector<1x256xf32>
    %401 = vector.broadcast %398 : f32 to vector<1x256xf32>
    %402 = arith.mulf %401, %396 : vector<1x256xf32>
    %403 = vector.broadcast %399 : f32 to vector<1x256xf32>
    %404 = arith.mulf %403, %397 : vector<1x256xf32>
    %405 = arith.addf %402, %404 : vector<1x256xf32>
    %406 = arith.mulf %400, %343 : vector<1x256xf32>
    %407 = arith.mulf %405, %406 : vector<1x256xf32>
    %408 = arith.addf %395, %407 : vector<1x256xf32>
    %409 = vector.broadcast %10 : f32 to vector<1x256xf32>
    %410 = arith.addf %408, %409 : vector<1x256xf32>
    %cst_132 = arith.constant 0.000000e+00 : f32
    %411 = vector.broadcast %cst_132 : f32 to vector<1x256xf32>
    %412 = arith.maximumf %410, %411 : vector<1x256xf32>
    %cst_133 = arith.constant 0.000000e+00 : f32
    %413 = vector.broadcast %cst_133 : f32 to vector<1x256xf32>
    %414 = arith.subf %413, %412 : vector<1x256xf32>
    %415 = math.exp %414 : vector<1x256xf32>
    %cst_134 = arith.constant 1.000000e+00 : f32
    %416 = vector.broadcast %cst_134 : f32 to vector<1x256xf32>
    %417 = arith.addf %416, %415 : vector<1x256xf32>
    %418 = tpu.reciprocal %417 {approx = true} : vector<1x256xf32> -> vector<1x256xf32>
    %419 = vector.broadcast %67 : vector<4x1xf32> to vector<4x256xf32>
    %420 = vector.broadcast %418 : vector<1x256xf32> to vector<4x256xf32>
    %421 = arith.mulf %419, %420 : vector<4x256xf32>
    %422 = arith.mulf %421, %12 : vector<4x256xf32>
    %c0_135 = arith.constant 0 : index
    %c0_136 = arith.constant 0 : index
    %c0_137 = arith.constant 0 : index
    %423 = vector.load %arg17[%c0_135, %c0_136, %c0_137] : memref<1x4x256xf32, #tpu.memory_space<vmem>>, vector<1x4x256xf32>
    %424 = vector.shape_cast %423 : vector<1x4x256xf32> to vector<4x256xf32>
    %425 = vector.shape_cast %422 : vector<4x256xf32> to vector<1x4x256xf32>
    tpu.vector_store %arg17[%c0_135, %c0_136, %c0_137], %425 {strides = array<i32>} : memref<1x4x256xf32, #tpu.memory_space<vmem>>, vector<1x4x256xf32>,
    %426 = arith.mulf %421, %14 : vector<4x256xf32>
    %c0_138 = arith.constant 0 : index
    %c0_139 = arith.constant 0 : index
    %c0_140 = arith.constant 0 : index
    %427 = vector.load %arg18[%c0_138, %c0_139, %c0_140] : memref<1x4x256xf32, #tpu.memory_space<vmem>>, vector<1x4x256xf32>
    %428 = vector.shape_cast %427 : vector<1x4x256xf32> to vector<4x256xf32>
    %429 = vector.shape_cast %426 : vector<4x256xf32> to vector<1x4x256xf32>
    tpu.vector_store %arg18[%c0_138, %c0_139, %c0_140], %429 {strides = array<i32>} : memref<1x4x256xf32, #tpu.memory_space<vmem>>, vector<1x4x256xf32>,
    return
  }
  func.func @transform_0(%arg0: i32) -> (i32, i32, i32) {
    %c0_i32 = arith.constant 0 : i32
    %c0_i32_0 = arith.constant 0 : i32
    %c0_i32_1 = arith.constant 0 : i32
    return %arg0, %c0_i32, %c0_i32_0 : i32, i32, i32
  }
  func.func @transform_1(%arg0: i32) -> (i32, i32, i32) {
    %c0_i32 = arith.constant 0 : i32
    %c0_i32_0 = arith.constant 0 : i32
    %c0_i32_1 = arith.constant 0 : i32
    return %arg0, %c0_i32, %c0_i32_0 : i32, i32, i32
  }
  func.func @transform_2(%arg0: i32) -> (i32, i32) {
    %c0_i32 = arith.constant 0 : i32
    %c0_i32_0 = arith.constant 0 : i32
    %c0_i32_1 = arith.constant 0 : i32
    return %c0_i32, %c0_i32_0 : i32, i32
  }
  func.func @transform_3(%arg0: i32) -> (i32, i32) {
    %c0_i32 = arith.constant 0 : i32
    %c0_i32_0 = arith.constant 0 : i32
    %c0_i32_1 = arith.constant 0 : i32
    return %c0_i32, %c0_i32_0 : i32, i32
  }
  func.func @transform_4(%arg0: i32) -> (i32, i32) {
    %c0_i32 = arith.constant 0 : i32
    %c0_i32_0 = arith.constant 0 : i32
    %c0_i32_1 = arith.constant 0 : i32
    return %c0_i32, %c0_i32_0 : i32, i32
  }
  func.func @transform_5(%arg0: i32) -> (i32, i32) {
    %c0_i32 = arith.constant 0 : i32
    %c0_i32_0 = arith.constant 0 : i32
    %c0_i32_1 = arith.constant 0 : i32
    return %c0_i32, %c0_i32_0 : i32, i32
  }
  func.func @transform_6(%arg0: i32) -> (i32, i32) {
    %c0_i32 = arith.constant 0 : i32
    %c0_i32_0 = arith.constant 0 : i32
    %c0_i32_1 = arith.constant 0 : i32
    return %c0_i32, %c0_i32_0 : i32, i32
  }
  func.func @transform_7(%arg0: i32) -> (i32, i32) {
    %c0_i32 = arith.constant 0 : i32
    %c0_i32_0 = arith.constant 0 : i32
    %c0_i32_1 = arith.constant 0 : i32
    return %c0_i32, %c0_i32_0 : i32, i32
  }
  func.func @transform_8(%arg0: i32) -> (i32, i32) {
    %c0_i32 = arith.constant 0 : i32
    %c0_i32_0 = arith.constant 0 : i32
    %c0_i32_1 = arith.constant 0 : i32
    return %c0_i32, %c0_i32_0 : i32, i32
  }
  func.func @transform_9(%arg0: i32) -> (i32, i32) {
    %c0_i32 = arith.constant 0 : i32
    %c0_i32_0 = arith.constant 0 : i32
    %c0_i32_1 = arith.constant 0 : i32
    return %c0_i32, %c0_i32_0 : i32, i32
  }
  func.func @transform_10(%arg0: i32) -> (i32, i32) {
    %c0_i32 = arith.constant 0 : i32
    %c0_i32_0 = arith.constant 0 : i32
    %c0_i32_1 = arith.constant 0 : i32
    return %c0_i32, %c0_i32_0 : i32, i32
  }
  func.func @transform_11(%arg0: i32) -> (i32, i32) {
    %c0_i32 = arith.constant 0 : i32
    %c0_i32_0 = arith.constant 0 : i32
    %c0_i32_1 = arith.constant 0 : i32
    return %c0_i32, %c0_i32_0 : i32, i32
  }
  func.func @transform_12(%arg0: i32) -> (i32, i32) {
    %c0_i32 = arith.constant 0 : i32
    %c0_i32_0 = arith.constant 0 : i32
    %c0_i32_1 = arith.constant 0 : i32
    return %c0_i32, %c0_i32_0 : i32, i32
  }
  func.func @transform_13(%arg0: i32) -> (i32, i32) {
    %c0_i32 = arith.constant 0 : i32
    %c0_i32_0 = arith.constant 0 : i32
    %c0_i32_1 = arith.constant 0 : i32
    return %c0_i32, %c0_i32_0 : i32, i32
  }
  func.func @transform_14(%arg0: i32) -> i32 {
    %c0_i32 = arith.constant 0 : i32
    %c0_i32_0 = arith.constant 0 : i32
    return %c0_i32 : i32
  }
  func.func @transform_15(%arg0: i32) -> i32 {
    %c0_i32 = arith.constant 0 : i32
    %c0_i32_0 = arith.constant 0 : i32
    return %c0_i32 : i32
  }
  func.func @transform_16(%arg0: i32) -> (i32, i32, i32) {
    %c0_i32 = arith.constant 0 : i32
    %c0_i32_0 = arith.constant 0 : i32
    %c0_i32_1 = arith.constant 0 : i32
    return %arg0, %c0_i32, %c0_i32_0 : i32, i32, i32
  }
  func.func @transform_17(%arg0: i32) -> (i32, i32, i32) {
    %c0_i32 = arith.constant 0 : i32
    %c0_i32_0 = arith.constant 0 : i32
    %c0_i32_1 = arith.constant 0 : i32
    return %arg0, %c0_i32, %c0_i32_0 : i32, i32, i32
  }
}

</mosaic_0001>

<bundles_post_ra>
// kernel: tpu_custom_call.1
= control target key start
LH: loop header
LB: loop body
LE: loop exit
PB: predicated region body
PF: predicated region fallthrough
CT: control target
= control target key end

     0   :  { %s3607_s0 = inlined_call_operand.hbm [shape: f32[2,4,256], index: 0, kind: input, shape index: {}]   ;;  %s3608_s1 = inlined_call_operand.vmem [shape: f32[2,4,256], index: 1, kind: input, shape index: {}]   ;;  %s3609_s2 = inlined_call_operand.hbm [shape: f32[5,256], index: 2, kind: input, shape index: {}]   ;;  %s3610_s3 = inlined_call_operand.hbm [shape: f32[5,256], index: 3, kind: input, shape index: {}]   ;;  %s3611_s4 = inlined_call_operand.vmem [shape: f32[4,8], index: 4, kind: input, shape index: {}]   ;;  %s3612_s5 = inlined_call_operand.vmem [shape: f32[4,8], index: 5, kind: input, shape index: {}]   ;;  %s3613_s6 = inlined_call_operand.hbm [shape: f32[1,8], index: 6, kind: input, shape index: {}]   ;;  %s3614_s7 = inlined_call_operand.vmem [shape: f32[4,8], index: 7, kind: input, shape index: {}]   ;;  %s3615_s8 = inlined_call_operand.vmem [shape: f32[4,1], index: 8, kind: input, shape index: {}]   ;;  %s3616_s9 = inlined_call_operand.vmem [shape: f32[4,8], index: 9, kind: input, shape index: {}]   ;;  %s3617_s10 = inlined_call_operand.vmem [shape: f32[4,8], index: 10, kind: input, shape index: {}]   ;;  %s3618_s11 = inlined_call_operand.vmem [shape: f32[1,8], index: 11, kind: input, shape index: {}]   ;;  %s3619_s12 = inlined_call_operand.vmem [shape: f32[4,8], index: 12, kind: input, shape index: {}]   ;;  %s3620_s13 = inlined_call_operand.vmem [shape: f32[4,1], index: 13, kind: input, shape index: {}]   ;;  %s3621_s14 = inlined_call_operand.vmem [shape: f32[50], index: 14, kind: input, shape index: {}]   ;;  %s3622_s15 = inlined_call_operand.<no memory space> [shape: f32[1], index: 15, kind: input, shape index: {}]   ;;  %s3623_s16 = inlined_call_operand.hbm [shape: f32[2,4,256], index: 16, kind: output, shape index: {0}]   ;;  %s3624_s17 = inlined_call_operand.hbm [shape: f32[2,4,256], index: 17, kind: output, shape index: {1}]  }
   0x1   :  { %3631 = sst [smem:[#allocation22_spill]] %s3607_s0 }
   0x2   :  { %3632 = sst [smem:[#allocation23_spill]] %s3608_s1 }
   0x3   :  { %3633 = sst [smem:[#allocation24_spill]] %s3609_s2 }
   0x4   :  { %3634 = sst [smem:[#allocation25_spill]] %s3610_s3 }
   0x5   :  { %3635 = sst [smem:[#allocation26_spill]] %s3611_s4 }
   0x6   :  { %3636 = sst [smem:[#allocation27_spill]] %s3612_s5 }
   0x7   :  { %3637 = sst [smem:[#allocation28_spill]] %s3613_s6 }
   0x8   :  { %3638 = sst [smem:[#allocation29_spill]] %s3615_s8 }
   0x9   :  { %3639 = sst [smem:[#allocation30_spill]] %s3620_s13 }
   0xa   :  { %3640 = sst [smem:[#allocation31_spill]] %s3621_s14 }
   0xb   :  { %3641 = sst [smem:[#allocation32_spill]] %s3623_s16 }
   0xc   :  { %3642 = sst [smem:[#allocation33_spill]] %s3624_s17 }
   0xd   :  { %23 = sst [smem:[#allocation2]] %s3622_s15 }
   0xe   :  { %24 = vsyncpa [#allocation4], 0 }
   0xf   :  { %26 = vsyncpa [#allocation4 + $0x1], 0 }
  0x10   :  { %27 = vsyncpa [#allocation8], 0 }
  0x11   :  { %28 = vsyncpa [#allocation11], 0 }
  0x12   :  { %29 = vsyncpa [#allocation6], 0 }
  0x13   :  { %30 = vsyncpa [#allocation5], 0 }
  0x14   :  { %32 = vsyncpa [#allocation5 + $0x1], 0 }
  0x15   :  { %33 = vsyncpa [#allocation15], 0 }
  0x16   :  { %35 = vsyncpa [#allocation15 + $0x1], 0  ;;  %s2609_s26 = smov 0   ;;  %s2611_s27 = smov 0  }
  0x17   :  { %s2613_s28 = smov 0   ;;  %s2615_s29 = smov 0  }
  0x18 LB: > { %s2484_s15 = smov [#allocation7]   ;;  %s2630_s30 = sadd.s32 4294967295, %s2482_s29   ;;  %s2482_s29 = sphi %s2615_s29, %s3676_s29   ;;  %s2478_s28 = sphi %s2613_s28, %s3675_s28   ;;  %s2474_s27 = sphi %s2611_s27, %s3674_s27   ;;  %s2470_s26 = sphi %s2609_s26, %s3673_s26  }
  0x19   : > { %s457_s0 = sshll.u32 %s2484_s15, 4  ;;  %p2024_p0 = scmp.ge.s32.totalorder %s2482_s29, 1  ;;  %s2635_s0 = int_to_ptr.vmem [resolvable:$true] %s457_s0 }
  0x1a   : > { %p3628_p1 = scmp.eq.s32.totalorder %s2630_s30, 0  ;;  %p444_p2 = scmp.lt.s32.totalorder %s2482_s29, 3 }
  0x1b   : > { %s2485_s19 = smov [#allocation9]   ;;  %s2486_s20 = smov [#allocation10]  }
  0x1c   : > { %p2637_p3 = pnand %p2024_p0, %p444_p2  ;;  %s468_s1 = sshll.u32 %s2485_s19, 4  ;;  %s2644_s1 = int_to_ptr.vmem [resolvable:$true] %s468_s1 }
  0x1d   : > { %s485_s21 = sshll.u32 %s2486_s20, 4  ;;  %s3645_s14 = sld [smem:[#allocation31_spill]]  ;;  %s2652_s21 = int_to_ptr.vmem [resolvable:$true] %s485_s21 }
  0x1e   : > { %p2126_p5 = pneg %p2637_p3  ;;  %s3646_s2 = sld [smem:[#allocation24_spill]] }
  0x20   : > { %p2648_p6 = pnand %p2126_p5, %p3628_p1 }
  0x22   : > { %p2667_p8 = pneg %p2648_p6 }
  0x23   : > { %s517_s25 = sshll.u32 %s3645_s14, 4  ;;  %s2657_s25 = int_to_ptr.vmem [resolvable:$true] %s517_s25 }
  0x24   : > { %s2243_s17 = scalar_lea.hbm %s3646_s2, 256 }
  0x25   : > { %p2244_p7 = scmp.ne.s32.totalorder %s3646_s2, %s2243_s17  ;;  %p2250_p11 = scmp.lt.u32.totalorder %s2243_s17, %s3646_s2 }
  0x27   : > { %p2246_p9 = pnand %p2667_p8, %p2244_p7 }
  0x29   : > { %p2247_p10 = pneg %p2246_p9 }
  0x2b   : > { %p2252_p12 = pnand %p2250_p11, %p2247_p10 }
  0x2d   : > { %2255 = shalt.err (!%p2252_p12)
}
  0x2e   : > { %s2256_s16 = scalar_lea.vmem %s2635_s0, 256  ;;  %p2264_p5 = scmp.lt.s32.totalorder %s2635_s0, %s2635_s0 }
  0x2f   : > { %p2257_p13 = scmp.ne.s32.totalorder %s2635_s0, %s2256_s16  ;;  %p2265_p4 = scmp.lt.s32.totalorder %s2256_s16, %s2256_s16 }
  0x31   : > { %p2259_p0 = pnand %p2257_p13, %p2667_p8  ;;  %p2266_p7 = por %p2265_p4, %p2264_p5 }
  0x33   : > { %p2260_p2 = pneg %p2259_p0 }
  0x35   : > { %p2267_p9 = pnand %p2266_p7, %p2260_p2 }
  0x37   : > { %2270 = shalt.err (!%p2267_p9)
}
  0x38   : > { %2129 = dma.hbm_to_vmem [thread:$0]  (!%p2648_p6), %s3646_s2, 256, %s2635_s0, [#allocation8]  }
  0x39   : > { %s3648_s3 = sld [smem:[#allocation25_spill]] }
  0x3f   : > { %s2271_s23 = scalar_lea.hbm %s3648_s3, 256 }
  0x40   : > { %p2272_p10 = scmp.ne.s32.totalorder %s3648_s3, %s2271_s23  ;;  %p2278_p12 = scmp.lt.u32.totalorder %s2271_s23, %s3648_s3 }
  0x42   : > { %p2274_p4 = pnand %p2272_p10, %p2667_p8 }
  0x44   : > { %p2275_p11 = pneg %p2274_p4 }
  0x46   : > { %p2280_p13 = pnand %p2278_p12, %p2275_p11 }
  0x48   : > { %2283 = shalt.err (!%p2280_p13)
}
  0x49   : > { %s2284_s0 = scalar_lea.vmem %s2644_s1, 256  ;;  %p2292_p7 = scmp.lt.s32.totalorder %s2644_s1, %s2644_s1 }
  0x4a   : > { %p2285_p0 = scmp.ne.s32.totalorder %s2644_s1, %s2284_s0  ;;  %p2293_p9 = scmp.lt.s32.totalorder %s2284_s0, %s2284_s0 }
  0x4c   : > { %p2287_p2 = pnand %p2285_p0, %p2667_p8  ;;  %p2294_p10 = por %p2293_p9, %p2292_p7 }
  0x4e   : > { %p2288_p5 = pneg %p2287_p2 }
  0x50   : > { %p2295_p4 = pnand %p2294_p10, %p2288_p5 }
  0x52   : > { %2298 = shalt.err (!%p2295_p4)
}
  0x53   : > { %2132 = dma.hbm_to_vmem [thread:$0]  (!%p2648_p6), %s3648_s3, 256, %s2644_s1, [#allocation8]  }
  0x54   : > { %s3649_s6 = sld [smem:[#allocation28_spill]] }
  0x5a   : > { %s2299_s19 = scalar_lea.hbm %s3649_s6, 16 }
  0x5b   : > { %p2300_p11 = scmp.ne.s32.totalorder %s3649_s6, %s2299_s19  ;;  %p2306_p0 = scmp.lt.u32.totalorder %s2299_s19, %s3649_s6 }
  0x5d   : > { %p2302_p12 = pnand %p2300_p11, %p2667_p8 }
  0x5f   : > { %p2303_p13 = pneg %p2302_p12 }
  0x61   : > { %p2308_p2 = pnand %p2306_p0, %p2303_p13 }
  0x63   : > { %2311 = shalt.err (!%p2308_p2)
}
  0x64   : > { %s2312_s1 = scalar_lea.vmem %s2652_s21, 16  ;;  %s2319_s0 = scalar_lea.vmem %s2652_s21, 32 }
  0x65   : > { %p2313_p5 = scmp.ne.s32.totalorder %s2652_s21, %s2312_s1  ;;  %p2320_p10 = scmp.lt.s32.totalorder %s2652_s21, %s2652_s21 }
  0x66   : > { %p2321_p4 = scmp.lt.s32.totalorder %s2319_s0, %s2312_s1 }
  0x67   : > { %p2315_p7 = pnand %p2313_p5, %p2667_p8 }
  0x68   : > { %p2322_p11 = por %p2321_p4, %p2320_p10 }
  0x69   : > { %p2316_p9 = pneg %p2315_p7 }
  0x6b   : > { %p2323_p12 = pnand %p2322_p11, %p2316_p9 }
  0x6d   : > { %2326 = shalt.err (!%p2323_p12)
}
  0x6e   : > { %2135 = dma.hbm_to_vmem [thread:$0]  (!%p2648_p6), %s3649_s6, 16, %s2652_s21, [#allocation11]  }
  0x6f   : > { %s2327_s17 = scalar_lea.vmem %s2657_s25, 16  ;;  %p2335_p5 = scmp.lt.s32.totalorder %s2657_s25, %s2657_s25 }
  0x70   : > { %p2328_p13 = scmp.ne.s32.totalorder %s2657_s25, %s2327_s17  ;;  %p2336_p7 = scmp.lt.s32.totalorder %s2327_s17, %s2327_s17 }
  0x72   : > { %p2330_p0 = pnand %p2328_p13, %p2667_p8  ;;  %p2337_p9 = por %p2336_p7, %p2335_p5 }
  0x74   : > { %p2331_p2 = pneg %p2330_p0 }
  0x76   : > { %p2338_p10 = pnand %p2337_p9, %p2331_p2 }
  0x78   : > { %2341 = shalt.err (!%p2338_p10)
}
  0x79   : > { %s2487_s15 = smov [#allocation12]   ;;  %s2023_s13 = sadd.s32 4294967294, %s2482_s29  }
  0x7a   : > { %2138 = dma.vmem_to_smem (!%p2648_p6), %s2657_s25, 16, %s2487_s15, [#allocation6]  }
  0x7b   : > { %s2746_s21 = sadd.s32 1, %s2482_s29   ;;  %s48_s19 = sadd.s32 1, %s2478_s28 }
  0x7c   : > { %s45_s22 = ssub.s32 %s2482_s29, %s2746_s21  ;;  %p55_p4 = scmp.ne.s32.totalorder %s2478_s28, %s2474_s27 }
  0x7d   : > { %p46_p8 = scmp.eq.s32.totalorder %s45_s22, 0  ;;  %p56_p11 = scmp.eq.s32.totalorder %s2482_s29, 0 }
  0x7e   : > { %p61_p12 = scmp.ne.s32.totalorder %s2474_s27, %s2470_s26  ;;  %p405_p0 = scmp.eq.s32.totalorder %s2630_s30, 1 }
  0x7f   : > { %s2757_s20 = scalar_select %p46_p8, %s2478_s28, %s48_s19  }
  0x80   : > { %p2759_p13 = por %p56_p11, %p55_p4  ;;  %p2765_p6 = por %p3628_p1, %p61_p12 }
  0x81   : > { %p411_p2 = scmp.eq.s32.totalorder %s2023_s13, 1  ;;  %p2154_p5 = scmp.lt.s32.totalorder %s2482_s29, 2 }
  0x82   : > { %s3651_s25 = scalar_select %p2765_p6, 1, 0 }
  0x83   : > { %s531_s24 = sand.u32 1, %s2478_s28   ;;  %p2772_p7 = por %p405_p0, %p55_p4 }
  0x84   : > { %p2776_p9 = por %p411_p2, %p61_p12  ;;  %s2030_s0 = sshll.u32 %s531_s24, 3 }
  0x85   : > { %s3652_s16 = scalar_select %p2772_p7, 1, 0 }
  0x86   : > { %s3653_s1 = scalar_select %p2776_p9, 1, 0 }
  0x87   : > { %s2100_s8 = sshll.u32 %s2482_s29, 7  ;;  %s3654_s15 = sld [smem:[#allocation22_spill]] }
  0x88   : > { %s535_s13 = scalar_lea.vmem [#allocation3], %s2030_s0  ;;  %p2790_p10 = pnand %p2154_p5, %p2759_p13 }
  0x89   : > { %s543_s19 = sshll.u32 %s535_s13, 4  ;;  %s532_s3 = scalar_lea.sflag [#allocation4], %s531_s24  ;;  %s2786_s19 = int_to_ptr.vmem [resolvable:$true] %s543_s19 }
  0x8a   : > { %p2344_p4 = pneg %p2790_p10 }
  0x8d   : > { %s2784_s22 = scalar_lea.hbm %s3654_s15, %s2100_s8  ;;  %s2347_s14 = scalar_lea.hbm %s3654_s15, 256 }
  0x8e   : > { %s2342_s6 = scalar_lea.hbm %s2784_s22, 128  ;;  %p2348_p13 = scmp.lt.u32.totalorder %s2784_s22, %s3654_s15 }
  0x8f   : > { %p2343_p8 = scmp.ne.s32.totalorder %s2784_s22, %s2342_s6  ;;  %p2349_p0 = scmp.lt.u32.totalorder %s2347_s14, %s2342_s6 }
  0x90   : > { %p2351_p5 = scmp.lt.u32.totalorder %s2342_s6, %s2784_s22 }
  0x91   : > { %p2345_p11 = pnand %p2344_p4, %p2343_p8  ;;  %p2350_p2 = por %p2349_p0, %p2348_p13 }
  0x93   : > { %p2346_p12 = pneg %p2345_p11  ;;  %p2352_p1 = por %p2351_p5, %p2350_p2 }
  0x95   : > { %p2353_p9 = pnand %p2352_p1, %p2346_p12 }
  0x97   : > { %2356 = shalt.err (!%p2353_p9)
}
  0x98   : > { %s2357_s24 = scalar_lea.vmem %s2786_s19, 128  ;;  %s2488_s13 = smov [#allocation3]  }
  0x99   : > { %p2358_p8 = scmp.ne.s32.totalorder %s2786_s19, %s2357_s24  ;;  %s2362_s0 = sshll.u32 %s2488_s13, 4  ;;  %s2363_s0 = int_to_ptr.vmem [resolvable:$false] %s2362_s0 }
  0x9a   : > { %s2364_s8 = scalar_lea.vmem %s2363_s0, 256  ;;  %p2365_p6 = scmp.lt.s32.totalorder %s2786_s19, %s2363_s0 }
  0x9b   : > { %p2360_p11 = pnand %p2358_p8, %p2344_p4  ;;  %p2366_p13 = scmp.lt.s32.totalorder %s2364_s8, %s2357_s24 }
  0x9d   : > { %p2361_p7 = pneg %p2360_p11  ;;  %p2367_p0 = por %p2366_p13, %p2365_p6 }
  0x9f   : > { %p2368_p2 = pnand %p2367_p0, %p2361_p7 }
  0xa1   : > { %2371 = shalt.err (!%p2368_p2)
}
  0xa2   : > { %2142 = dma.hbm_to_vmem [thread:$0]  (!%p2790_p10), %s2784_s22, 128, %s2786_s19, %s532_s3  }
  0xa3   : > { %560 = sbr.rel (%p2637_p3) target bundleno = 750 (0x2ee), region = 84  ;;  %s2822_s6 = sand.u32 (!%p2637_p3), 1, %s2474_s27  }
  0xa4   : > { %s2825_s14 = sshll.u32 (!%p2637_p3), %s2822_s6, 3  ;;  %s563_s23 = scalar_lea.sflag (!%p2637_p3), [#allocation4], %s2822_s6 }
  0xa5   : > { %s566_s17 = scalar_lea.vmem (!%p2637_p3), [#allocation3], %s2825_s14  ;;  %p3656_p1 = scmp.ne.s32.totalorder (!%p2637_p3), %s3651_s25, 0 }
  0xaa   : > { %2445 = dma.done.wait (%p3656_p1), %s563_s23, 128  }
  0xab   : > { %2447 = vsyncadd (%p3656_p1), %s563_s23, 4294967168  ;;  %p3657_p6 = scmp.eq.s32.totalorder %s2630_s30, 0 }
  0xad   : > { %2449 = dma.done.wait (%p3657_p6), [#allocation8], 512   ;;  %p3658_p3 = pmov %p3657_p6 }
  0xaf   : > { %2451 = vsyncadd (%p3658_p3), [#allocation8], 4294966784  ;;  %p3659_p7 = pmov %p3658_p3 }
  0xb0   : > { %p3660_p9 = pmov %p3658_p3 }
  0xb1   : > { %2453 = dma.done.wait (%p3659_p7), [#allocation11], 16  }
  0xb2   : > { %2455 = vsyncadd (%p3660_p9), [#allocation11], 4294967280  ;;  %p3661_p10 = pmov %p3658_p3 }
  0xb3   : > { %p3662_p4 = pmov %p3658_p3 }
  0xb4   : > { %2457 = dma.done.wait (%p3661_p10), [#allocation6], 16  }
  0xb5   : > { %2459 = vsyncadd (%p3662_p4), [#allocation6], 4294967280 }
  0xb6   : > { %587 = sfence }
  0xb7   : > { %v660_v0 = vld [vmem:[%s566_s17] sm:$0xff]  ;;  %vm665_vm0 = vcmask 1043456   ;;  %p644_p12 = scmp.lt.s32.totalorder %s2630_s30, 1  ;;  %s3663_s22 = sld [smem:[#allocation23_spill]]  ;;  %vm692_vm1 = vcmask 60416  }
  0xb8   : > { %v2848_v1 = vcombine.high %v660_v0, %v660_v0  ;;  %v666_v2 = vsel %vm665_vm0, %v660_v0, -inf  ;;  %v679_v3 = vsel %vm665_vm0, %v660_v0, 0.0  ;;  %s2489_s24 = smov 34   ;;  %s2490_s13 = smov 33  }
  0xb9   : > { %v782_v4 = vrot.slane %v666_v2, 4  ;;  %v754_v5 = vrot.slane %v679_v3, 4  ;;  %s645_s2 = scalar_select %p644_p12, %s2630_s30, 1 }
  0xba   : > { %v667_v6 = vsel %vm665_vm0, %v2848_v1, -inf  ;;  %v680_v7 = vsel %vm665_vm0, %v2848_v1, 0.0  ;;  %s2491_s0 = smov 32   ;;  %s2492_s8 = smov 31  }
  0xbb   : > { %v668_v8 = vmax.f32 %v666_v2, %v667_v6  ;;  %v783_v9 = vmax.f32 %v666_v2, %v782_v4  ;;  %v681_v10 = vadd.f32 %v680_v7, %v679_v3  ;;  %s2101_s3 = sshll.u32 %s645_s2, 3  ;;  %v755_v11 = vadd.f32 %v754_v5, %v679_v3  ;;  %s2493_s23 = smov 30  }
  0xbc   : > { %v760_v12 = vrot.slane %v680_v7, 4  ;;  %v788_v18 = vrot.slane %v667_v6, 4  ;;  %s2494_s2 = smov 18   ;;  %s2496_s18 = smov 16  }
  0xbd   : > { %s2860_s19 = scalar_lea.vmem %s3663_s22, %s2101_s3  ;;  %669 = vmax.xlane.f32.xlu1 %v668_v8  ;;  %682 = vadd.xlane.f32.xlu0 %v681_v10  ;;  %v784_v17 = vrot.slane %v783_v9, 2  ;;  %v756_v21 = vrot.slane %v755_v11, 2  ;;  %s2495_s3 = smov 17  }
  0xbe   : > { %v661_v13 = vld [vmem:[%s2860_s19] sm:$0xff]  ;;  %v761_v14 = vadd.f32 %v760_v12, %v680_v7  ;;  %v789_v30 = vmax.f32 %v667_v6, %v788_v18  ;;  %s2497_s25 = smov 15   ;;  %s2498_s22 = smov 14  }
  0xbf   : > { %v2863_v15 = vcombine.high %v661_v13, %v661_v13  ;;  %v685_v16 = vsel %vm665_vm0, %v661_v13, 0.0  ;;  %v674_v20 = vsel %vm665_vm0, %v661_v13, -inf  ;;  %v785_v29 = vmax.f32 %v783_v9, %v784_v17  ;;  %s3664_s4 = sld [smem:[#allocation26_spill]]  ;;  %s3665_s5 = sld [smem:[#allocation27_spill]] }
  0xc0   : > { %v766_v19 = vrot.slane %v685_v16, 4  ;;  %v762_v22 = vrot.slane %v761_v14, 2  ;;  %v794_v32 = vrot.slane %v674_v20, 4  ;;  %v757_v33 = vadd.f32 %v756_v21, %v755_v11  ;;  %p3670_p8 = scmp.ne.s32.totalorder %s3652_s16, 0 }
  0xc1   : > { %v686_v23 = vsel %vm665_vm0, %v2863_v15, 0.0  ;;  %v675_v24 = vsel %vm665_vm0, %v2863_v15, -inf  ;;  %v790_v41 = vrot.slane %v789_v30, 2  ;;  %v786_v43 = vrot.slane %v785_v29, 1 }
  0xc2   : > { %v687_v25 = vadd.f32 %v686_v23, %v685_v16  ;;  %v767_v26 = vadd.f32 %v766_v19, %v685_v16  ;;  %v772_v27 = vrot.slane %v686_v23, 4  ;;  %v676_v28 = vmax.f32 %v674_v20, %v675_v24 }
  0xc3   : > { %v763_v34 = vadd.f32 %v762_v22, %v761_v14  ;;  %v800_v36 = vrot.slane %v675_v24, 4  ;;  %v795_v38 = vmax.f32 %v674_v20, %v794_v32  ;;  %v758_v44 = vrot.slane %v757_v33, 1 }
  0xc4   : > { %v768_v31 = vrot.slane %v767_v26, 2  ;;  %688 = vadd.xlane.f32.xlu0 %v687_v25  ;;  %v773_v35 = vadd.f32 %v772_v27, %v686_v23  ;;  %677 = vmax.xlane.f32.xlu1 %v676_v28  ;;  %v787_v52 = vmax.f32 %v785_v29, %v786_v43  ;;  %v791_v53 = vmax.f32 %v789_v30, %v790_v41  ;;  %v2958_v23 = vld [vmem:[#allocation9] ss:$8 sm:$0x3] }
  0xc5   : > { %v801_v40 = vmax.f32 %v675_v24, %v800_v36  ;;  %v796_v42 = vrot.slane %v795_v38, 2  ;;  %v764_v45 = vrot.slane %v763_v34, 1  ;;  %v759_v54 = vadd.f32 %v758_v44, %v757_v33  ;;  %v649_v9 = vld [vmem:[%s3664_s4] sm:$0xf] }
  0xc6   : > { %v769_v37 = vadd.f32 %v768_v31, %v767_v26  ;;  %v774_v39 = vrot.slane %v773_v35, 2  ;;  %v792_v60 = vrot.slane %v791_v53, 1  ;;  %v650_v10 = vld [vmem:[%s3665_s5] sm:$0xf]  ;;  %v711_v11 = vlaneseq }
  0xc7   : > { %v797_v48 = vmax.f32 %v795_v38, %v796_v42  ;;  %v802_v49 = vrot.slane %v801_v40, 2  ;;  %v765_v55 = vadd.f32 %v764_v45, %v763_v34  ;;  %v2960_v25 = vld [vmem:[#allocation7] ss:$8 sm:$0x3]  ;;  %v655_v45 = vld [vmem:[%s3617_s10] sm:$0xf] }
  0xc8   : > { %v775_v46 = vadd.f32 %v774_v39, %v773_v35  ;;  %v770_v47 = vrot.slane %v769_v37, 1  ;;  %v793_v2 = vmax.f32 %v791_v53, %v792_v60  ;;  %v2948_v17 = vand.u32 127, %v711_v11  ;;  %v654_v39 = vld [vmem:[%s3616_s9] sm:$0xf] }
  0xc9   : > { %v798_v51 = vrot.slane %v797_v48, 1  ;;  %v803_v59 = vmax.f32 %v801_v40, %v802_v49  ;;  %v712_v22 = vshrl.u32 %v711_v11, 7  ;;  %v2967_v29 = vmul.f32 %v2960_v25, %v2958_v23  ;;  %v2989_v43 = vld [vmem:[#allocation7 + $0x1] ss:$8 sm:$0x3] }
  0xca   : > { %v776_v50 = vrot.slane %v775_v46, 1  ;;  %v771_v56 = vadd.f32 %v770_v47, %v769_v37  ;;  %vm815_vm2 = vcmp.lt.s32.totalorder %v2948_v17, 34  ;;  %vm855_vm3 = vcmp.lt.s32.totalorder %v2948_v17, 33 }
  0xcb   : > { %v799_v58 = vmax.f32 %v797_v48, %v798_v51  ;;  %v804_v63 = vrot.slane %v803_v59, 1  ;;  %v2969_v30 = vsub.s32 1, %v712_v22  ;;  %vm896_vm4 = vcmp.lt.s32.totalorder %v2948_v17, 32 }
  0xcc   : > { %v777_v57 = vadd.f32 %v776_v50, %v775_v46  ;;  %v778_v61 = vadd.f32 %v771_v56, %v759_v54  ;;  %v2999_v54 = vsub.s32 0, %v712_v22  ;;  %vm937_vm5 = vcmp.lt.s32.totalorder %v2948_v17, 31 }
  0xcd   : > { %v2871_v0 = vmax.f32 %v787_v52, %v799_v58  ;;  %v805_v5 = vmax.f32 %v803_v59, %v804_v63  ;;  %v844_v41 = vrot.slane %v2967_v29, %v2969_v30  ;;  %vm978_vm6 = vcmp.lt.s32.totalorder %v2948_v17, 30 }
  0xce   : > { %v779_v62 = vadd.f32 %v777_v57, %v765_v55  ;;  %v2873_v3 = vmul.f32 0.125, %v778_v61  ;;  %v876_v55 = vmul.f32 %v2989_v43, %v2958_v23  ;;  %vm1021_vm7 = vcmp.lt.s32.totalorder %v2948_v17, 18 }
  0xcf   : > { %v2878_v6 = vmax.f32 %v793_v2, %v805_v5  ;;  %vm1060_vm8 = vcmp.lt.s32.totalorder %v2948_v17, 17  ;;  %vm1099_vm9 = vcmp.lt.s32.totalorder %v2948_v17, 16  ;;  %vm1138_vm10 = vcmp.lt.s32.totalorder %v2948_v17, 15 }
  0xd0   : > { %v2875_v4 = vmul.f32 0.125, %v779_v62  ;;  %vm1177_vm11 = vcmp.lt.s32.totalorder %v2948_v17, 14  ;;  %vm1218_vm12 = vcmp.lt.s32.totalorder %v2948_v17, 2  ;;  %vm1257_vm13 = vcmp.lt.s32.totalorder %v2948_v17, 1 }
  0xd1   : > { %vm1322_vm14 = vcmp.lt.s32.totalorder %v2948_v17, 127  ;;  %vm1361_vm15 = vcmp.lt.s32.totalorder %v2948_v17, 126  ;;  %vm1402_vm0 = vcmp.lt.s32.totalorder %v2948_v17, 114 }
  0xd5   : > { %818 = vrot.lane.b32.xlu1 %v2871_v0, %s2489_s24 }
  0xd9   : > { %811 = vrot.lane.b32.xlu1 %v2875_v4, %s2489_s24 }
  0xda   : > { %809 = vrot.lane.b32.xlu0 %v2873_v3, %s2489_s24 }
  0xdd   : > { %820 = vrot.lane.b32.xlu1 %v2878_v6, %s2489_s24  ;;  %s2499_s24 = smov 2  }
  0xde   : > { %851 = vrot.lane.b32.xlu0 %v2873_v3, %s2490_s13 }
  0xe1   : > { %853 = vrot.lane.b32.xlu1 %v2875_v4, %s2490_s13 }
  0xe2   : > { %858 = vrot.lane.b32.xlu0 %v2871_v0, %s2490_s13 }
  0xe5   : > { %860 = vrot.lane.b32.xlu1 %v2878_v6, %s2490_s13  ;;  %s2500_s13 = smov 1  }
  0xe6   : > { %892 = vrot.lane.b32.xlu0 %v2873_v3, %s2491_s0 }
  0xe9   : > { %894 = vrot.lane.b32.xlu1 %v2875_v4, %s2491_s0 }
  0xea   : > { %899 = vrot.lane.b32.xlu0 %v2871_v0, %s2491_s0 }
  0xed   : > { %901 = vrot.lane.b32.xlu1 %v2878_v6, %s2491_s0  ;;  %s2501_s0 = smov 127  }
  0xee   : > { %933 = vrot.lane.b32.xlu0 %v2873_v3, %s2492_s8 }
  0xf1   : > { %935 = vrot.lane.b32.xlu1 %v2875_v4, %s2492_s8 }
  0xf2   : > { %940 = vrot.lane.b32.xlu0 %v2871_v0, %s2492_s8 }
  0xf5   : > { %942 = vrot.lane.b32.xlu1 %v2878_v6, %s2492_s8  ;;  %s2502_s8 = smov 126  }
  0xf6   : > { %974 = vrot.lane.b32.xlu0 %v2873_v3, %s2493_s23 }
  0xf9   : > { %976 = vrot.lane.b32.xlu1 %v2875_v4, %s2493_s23 }
  0xfa   : > { %981 = vrot.lane.b32.xlu0 %v2871_v0, %s2493_s23 }
  0xfd   : > { %983 = vrot.lane.b32.xlu1 %v2878_v6, %s2493_s23  ;;  %s2503_s23 = smov 114  }
  0xfe   : > { %1017 = vrot.lane.b32.xlu0 %v2873_v3, %s2494_s2 }
 0x101   : > { %1019 = vrot.lane.b32.xlu1 %v2875_v4, %s2494_s2 }
 0x102   : > { %1024 = vrot.lane.b32.xlu0 %v2871_v0, %s2494_s2 }
 0x105   : > { %1026 = vrot.lane.b32.xlu1 %v2878_v6, %s2494_s2  ;;  %s2504_s2 = smov 113  }
 0x106   : > { %1056 = vrot.lane.b32.xlu0 %v2873_v3, %s2495_s3 }
 0x109   : > { %1058 = vrot.lane.b32.xlu1 %v2875_v4, %s2495_s3 }
 0x10a   : > { %1063 = vrot.lane.b32.xlu0 %v2871_v0, %s2495_s3 }
 0x10d   : > { %1065 = vrot.lane.b32.xlu1 %v2878_v6, %s2495_s3  ;;  %s3069_s3 = sld [smem:[#allocation12 + $0x4]] }
 0x10e   : > { %1095 = vrot.lane.b32.xlu0 %v2873_v3, %s2496_s18 }
 0x111   : > { %1097 = vrot.lane.b32.xlu1 %v2875_v4, %s2496_s18 }
 0x112   : > { %1102 = vrot.lane.b32.xlu0 %v2871_v0, %s2496_s18 }
 0x115   : > { %1104 = vrot.lane.b32.xlu1 %v2878_v6, %s2496_s18  ;;  %s2506_s18 = smov 111  }
 0x116   : > { %1134 = vrot.lane.b32.xlu0 %v2873_v3, %s2497_s25 }
 0x119   : > { %1136 = vrot.lane.b32.xlu1 %v2875_v4, %s2497_s25 }
 0x11a   : > { %1141 = vrot.lane.b32.xlu0 %v2871_v0, %s2497_s25 }
 0x11d   : > { %1143 = vrot.lane.b32.xlu1 %v2878_v6, %s2497_s25  ;;  %s3138_s25 = sld [smem:[#allocation12 + $0x7]] }
 0x11e   : > { %1173 = vrot.lane.b32.xlu0 %v2873_v3, %s2498_s22 }
 0x121   : > { %1175 = vrot.lane.b32.xlu1 %v2875_v4, %s2498_s22 }
 0x122   : > { %1180 = vrot.lane.b32.xlu0 %v2871_v0, %s2498_s22 }
 0x125   : > { %1182 = vrot.lane.b32.xlu1 %v2878_v6, %s2498_s22  ;;  %s3141_s22 = sld [smem:[#allocation12 + $0x20]] }
 0x126   : > { %1214 = vrot.lane.b32.xlu0 %v2873_v3, %s2499_s24 }
 0x129   : > { %1216 = vrot.lane.b32.xlu1 %v2875_v4, %s2499_s24 }
 0x12a   : > { %1221 = vrot.lane.b32.xlu0 %v2871_v0, %s2499_s24 }
 0x12d   : > { %1223 = vrot.lane.b32.xlu1 %v2878_v6, %s2499_s24  ;;  %s2951_s24 = sld [smem:[#allocation12]] }
 0x12e   : > { %1253 = vrot.lane.b32.xlu0 %v2873_v3, %s2500_s13 }
 0x131   : > { %1255 = vrot.lane.b32.xlu1 %v2875_v4, %s2500_s13 }
 0x132   : > { %1260 = vrot.lane.b32.xlu0 %v2871_v0, %s2500_s13 }
 0x133   : > { %v827_v36 = vstv %s2951_s24  ;;  %s3011_s24 = sld [smem:[#allocation12 + $0x2]] }
 0x135   : > { %1262 = vrot.lane.b32.xlu1 %v2878_v6, %s2500_s13  ;;  %s2953_s13 = sld [smem:[#allocation12 + $0x19]] }
 0x136   : > { %1318 = vrot.lane.b32.xlu0 %v2873_v3, %s2501_s0 }
 0x139   : > { %1320 = vrot.lane.b32.xlu1 %v2875_v4, %s2501_s0 }
 0x13a   : > { %1325 = vrot.lane.b32.xlu0 %v2871_v0, %s2501_s0 }
 0x13b   : > { %v830_v37 = vstv %s2953_s13  ;;  %s3017_s13 = sld [smem:[#allocation12 + $0x1b]] }
 0x13d   : > { %1327 = vrot.lane.b32.xlu1 %v2878_v6, %s2501_s0  ;;  %s2505_s0 = smov 112  }
 0x13e   : > { %1357 = vrot.lane.b32.xlu0 %v2873_v3, %s2502_s8 }
 0x141   : > { %1359 = vrot.lane.b32.xlu1 %v2875_v4, %s2502_s8 }
 0x142   : > { %1364 = vrot.lane.b32.xlu0 %v2871_v0, %s2502_s8 }
 0x145   : > { %1366 = vrot.lane.b32.xlu1 %v2878_v6, %s2502_s8  ;;  %s2977_s8 = sld [smem:[#allocation12 + $0x1]] }
 0x146   : > { %1398 = vrot.lane.b32.xlu0 %v2873_v3, %s2503_s23 }
 0x149   : > { %1400 = vrot.lane.b32.xlu1 %v2875_v4, %s2503_s23 }
 0x14a   : > { %1405 = vrot.lane.b32.xlu0 %v2871_v0, %s2503_s23  ;;  %v683_v7 = vpop.xlane.xlu0 %682  ;;  %v670_v8 = vpop.xlane.xlu1 %669 }
 0x14b   : > { %v691_v13 = vmul.f32 %v670_v8, %v649_v9  ;;  %v684_v35 = vmul.f32 0.00390625, %v683_v7  ;;  %v840_v7 = vrot.slane %v2967_v29, %v2999_v54  ;;  %v868_v8 = vstv %s2977_s8  ;;  %s3044_s8 = sld [smem:[#allocation12 + $0x3]] }
 0x14d   : > { %1407 = vrot.lane.b32.xlu1 %v2878_v6, %s2503_s23  ;;  %v693_v20 = vsel %vm692_vm1, %v691_v13, 0.0  ;;  %s2979_s23 = sld [smem:[#allocation12 + $0x1a]]  ;;  %v720_v53 = vmul.f32 %v684_v35, %v654_v39  ;;  %v881_v13 = vrot.slane %v876_v55, %v2999_v54 }
 0x14e   : > { %1437 = vrot.lane.b32.xlu0 %v2873_v3, %s2504_s2  ;;  %v694_v26 = vrot.slane %v693_v20, 4 }
 0x14f   : > { %v721_v11 = vsel %vm692_vm1, %v720_v53, 0.0 }
 0x150   : > { %v695_v34 = vadd.f32 %v694_v26, %v693_v20  ;;  %v722_v29 = vrot.slane %v721_v11, 4 }
 0x151   : > { %v689_v12 = vpop.xlane.xlu0 %688  ;;  %1439 = vrot.lane.b32.xlu1 %v2875_v4, %s2504_s2  ;;  %v678_v14 = vpop.xlane.xlu1 %677 }
 0x152   : > { %1444 = vrot.lane.b32.xlu0 %v2871_v0, %s2504_s2  ;;  %v700_v16 = vmul.f32 %v678_v14, %v650_v10  ;;  %v690_v40 = vmul.f32 0.00390625, %v689_v12  ;;  %v696_v52 = vrot.slane %v695_v34, 2  ;;  %v885_v14 = vrot.slane %v876_v55, %v2969_v30 }
 0x153   : > { %v871_v9 = vstv %s2979_s23  ;;  %s3046_s23 = sld [smem:[#allocation12 + $0x1c]] }
 0x154   : > { %v701_v18 = vsel %vm692_vm1, %v700_v16, 0.0  ;;  %v728_v57 = vmul.f32 %v690_v40, %v655_v45  ;;  %v697_v5 = vadd.f32 %v696_v52, %v695_v34 }
 0x155   : > { %v810_v19 = vpop.permute.xlu0 %809  ;;  %1446 = vrot.lane.b32.xlu1 %v2878_v6, %s2504_s2  ;;  %v819_v21 = vpop.permute.xlu1 %818  ;;  %v702_v24 = vrot.slane %v701_v18, 4  ;;  %s2508_s2 = smov 98  }
 0x156   : > { %1476 = vrot.lane.b32.xlu0 %v2873_v3, %s2505_s0  ;;  %v729_v12 = vsel %vm692_vm1, %v728_v57, 0.0 }
 0x157   : > { %v703_v31 = vadd.f32 %v702_v24, %v701_v18 }
 0x159   : > { %v852_v27 = vpop.permute.xlu0 %851  ;;  %1478 = vrot.lane.b32.xlu1 %v2875_v4, %s2505_s0  ;;  %v812_v28 = vpop.permute.xlu1 %811  ;;  %v704_v44 = vrot.slane %v703_v31, 2 }
 0x15a   : > { %1483 = vrot.lane.b32.xlu0 %v2871_v0, %s2505_s0  ;;  %v816_v32 = vsel %vm815_vm2, %v810_v19, %v812_v28  ;;  %v817_v33 = vsel %vm815_vm2, %v812_v28, %v810_v19  ;;  %v698_v28 = vrot.slane %v697_v5, 1 }
 0x15b   : > { %v828_v48 = vmul.f32 %v827_v36, %v817_v33  ;;  %v829_v49 = vmul.f32 %v827_v36, %v816_v32  ;;  %v705_v61 = vadd.f32 %v704_v44, %v703_v31  ;;  %v730_v31 = vrot.slane %v729_v12, 4 }
 0x15c   : > { %v909_v44 = vstv %s3011_s24  ;;  %v699_v45 = vadd.f32 %v698_v28, %v697_v5  ;;  %s3094_s24 = sld [smem:[#allocation12 + $0x5]] }
 0x15d   : > { %v859_v38 = vpop.permute.xlu0 %858  ;;  %1485 = vrot.lane.b32.xlu1 %v2878_v6, %s2505_s0  ;;  %v821_v42 = vpop.permute.xlu1 %820  ;;  %s2507_s0 = smov 110   ;;  %v706_v18 = vrot.slane %v705_v61, 1 }
 0x15e   : > { %1515 = vrot.lane.b32.xlu0 %v2873_v3, %s2506_s18  ;;  %v822_v46 = vsel %vm815_vm2, %v819_v21, %v821_v42  ;;  %v823_v47 = vsel %vm815_vm2, %v821_v42, %v819_v21  ;;  %v3032_v21 = vld [vmem:[#allocation7 + $0x2] ss:$8 sm:$0x3]  ;;  %vm1480_vm2 = vcmp.lt.s32.totalorder %v2948_v17, 112 }
 0x15f   : > { %v831_v50 = vmul.f32 %v830_v37, %v823_v47  ;;  %v832_v51 = vmul.f32 %v830_v37, %v822_v46  ;;  %v917_v36 = vmul.f32 %v3032_v21, %v2958_v23  ;;  %v707_v37 = vadd.f32 %v706_v18, %v705_v61 }
 0x160   : > { %v723_v46 = vadd.f32 %v722_v29, %v721_v11  ;;  %v731_v47 = vadd.f32 %v730_v31, %v729_v12 }
 0x161   : > { %v893_v56 = vpop.permute.xlu0 %892  ;;  %v833_v58 = vadd.f32 %v831_v50, %v828_v48  ;;  %v834_v59 = vadd.f32 %v832_v51, %v829_v49  ;;  %1517 = vrot.lane.b32.xlu1 %v2875_v4, %s2506_s18  ;;  %v854_v60 = vpop.permute.xlu1 %853  ;;  %v912_v48 = vstv %s3017_s13  ;;  %v922_v52 = vrot.slane %v917_v36, %v2999_v54  ;;  %s3096_s13 = sld [smem:[#allocation12 + $0x1e]] }
 0x162   : > { %1522 = vrot.lane.b32.xlu0 %v2871_v0, %s2506_s18  ;;  %v856_v62 = vsel %vm855_vm3, %v852_v27, %v854_v60  ;;  %v857_v63 = vsel %vm855_vm3, %v854_v60, %v852_v27  ;;  %v926_v53 = vrot.slane %v917_v36, %v2969_v30  ;;  %v724_v5 = vrot.slane %v723_v46, 2  ;;  %v3080_v36 = vld [vmem:[#allocation7 + $0x4] ss:$8 sm:$0x3] }
 0x163   : > { %v848_v2 = vmul.f32 %v844_v41, %v834_v59  ;;  %v869_v22 = vmul.f32 %v868_v8, %v857_v63  ;;  %v870_v24 = vmul.f32 %v868_v8, %v856_v62  ;;  %v847_v40 = vmul.f32 %v840_v7, %v833_v58  ;;  %v3057_v58 = vld [vmem:[#allocation7 + $0x3] ss:$8 sm:$0x3] }
 0x164   : > { %v708_v59 = vadd.f32 %v707_v37, %v699_v45  ;;  %v732_v7 = vrot.slane %v731_v47, 2  ;;  %v958_v12 = vmul.f32 %v3057_v58, %v2958_v23 }
 0x165   : > { %v900_v10 = vpop.permute.xlu0 %899  ;;  %1524 = vrot.lane.b32.xlu1 %v2878_v6, %s2506_s18  ;;  %v861_v16 = vpop.permute.xlu1 %860  ;;  %s3071_s18 = sld [smem:[#allocation12 + $0x1d]] }
 0x166   : > { %1554 = vrot.lane.b32.xlu0 %v2873_v3, %s2507_s0  ;;  %v862_v19 = vsel %vm855_vm3, %v859_v38, %v861_v16  ;;  %v863_v20 = vsel %vm855_vm3, %v861_v16, %v859_v38  ;;  %v963_v31 = vrot.slane %v958_v12, %v2999_v54  ;;  %vm1519_vm3 = vcmp.lt.s32.totalorder %v2948_v17, 111 }
 0x167   : > { %v872_v26 = vmul.f32 %v871_v9, %v863_v20  ;;  %v873_v27 = vmul.f32 %v871_v9, %v862_v19  ;;  %v725_v20 = vadd.f32 %v724_v5, %v723_v46 }
 0x169   : > { %v934_v32 = vpop.permute.xlu0 %933  ;;  %v874_v33 = vadd.f32 %v872_v26, %v869_v22  ;;  %v875_v34 = vadd.f32 %v873_v27, %v870_v24  ;;  %1556 = vrot.lane.b32.xlu1 %v2875_v4, %s2507_s0  ;;  %v895_v35 = vpop.permute.xlu1 %894  ;;  %v733_v22 = vadd.f32 %v732_v7, %v731_v47  ;;  %v950_v24 = vstv %s3044_s8  ;;  %s3162_s8 = sld [smem:[#allocation12 + $0x8]] }
 0x16a   : > { %v897_v38 = vsel %vm896_vm4, %v893_v56, %v895_v35  ;;  %v898_v39 = vsel %vm896_vm4, %v895_v35, %v893_v56  ;;  %v953_v26 = vstv %s3046_s23  ;;  %s3164_s23 = sld [smem:[#allocation12 + $0x21]] }
 0x16b   : > { %v888_v41 = vmul.f32 %v881_v13, %v874_v33  ;;  %v889_v42 = vmul.f32 %v885_v14, %v875_v34  ;;  %v910_v60 = vmul.f32 %v909_v44, %v898_v39  ;;  %v911_v61 = vmul.f32 %v909_v44, %v897_v38 }
 0x16c   : > { %v967_v33 = vrot.slane %v958_v12, %v2969_v30  ;;  %v734_v44 = vrot.slane %v733_v22, 1 }
 0x16d   : > { %v941_v49 = vpop.permute.xlu0 %940  ;;  %v890_v50 = vadd.f32 %v888_v41, %v847_v40  ;;  %v891_v51 = vadd.f32 %v889_v42, %v848_v2  ;;  %1563 = vrot.lane.b32.xlu1 %v2878_v6, %s2507_s0  ;;  %v902_v55 = vpop.permute.xlu1 %901  ;;  %v651_v2 = vld [vmem:[#allocation10] sm:$0x1]  ;;  %v726_v42 = vrot.slane %v725_v20, 1 }
 0x16e   : > { %v903_v56 = vsel %vm896_vm4, %v900_v10, %v902_v55  ;;  %v904_v57 = vsel %vm896_vm4, %v902_v55, %v900_v10  ;;  %v709_v16 = vadd.f32 %v708_v59, %v651_v2  ;;  %v735_v59 = vadd.f32 %v734_v44, %v733_v22 }
 0x16f   : > { %v913_v62 = vmul.f32 %v912_v48, %v904_v57  ;;  %v914_v63 = vmul.f32 %v912_v48, %v903_v56  ;;  %v652_v56 = vld [vmem:[%s3614_s7] sm:$0xf]  ;;  %v727_v57 = vadd.f32 %v726_v42, %v725_v20  ;;  %vm1558_vm4 = vcmp.lt.s32.totalorder %v2948_v17, 110 }
 0x170   : > { %v710_v37 = vmax.f32 %v709_v16, 0.0 }
 0x171   : > { %v975_v8 = vpop.permute.xlu0 %974  ;;  %v915_v9 = vadd.f32 %v913_v62, %v910_v60  ;;  %v916_v11 = vadd.f32 %v914_v63, %v911_v61  ;;  %1597 = vrot.lane.b32.xlu1 %v2875_v4, %s2508_s2  ;;  %v936_v10 = vpop.permute.xlu1 %935  ;;  %v991_v60 = vstv %s3069_s3  ;;  %v994_v61 = vstv %s3071_s18  ;;  %s3119_s3 = sld [smem:[#allocation12 + $0x6]]  ;;  %s3121_s18 = sld [smem:[#allocation12 + $0x1f]] }
 0x172   : > { %v938_v13 = vsel %vm937_vm5, %v934_v32, %v936_v10  ;;  %v939_v14 = vsel %vm937_vm5, %v936_v10, %v934_v32  ;;  %v3105_v10 = vld [vmem:[#allocation9 + $0x1] ss:$8 sm:$0x3] }
 0x173   : > { %v929_v18 = vmul.f32 %v922_v52, %v915_v9  ;;  %v930_v19 = vmul.f32 %v926_v53, %v916_v11  ;;  %v951_v38 = vmul.f32 %v950_v24, %v939_v14  ;;  %v952_v39 = vmul.f32 %v950_v24, %v938_v13 }
 0x174   : > { %v714_v52 = vrot.slane %v710_v37, %v2999_v54 }
 0x175   : > { %v982_v27 = vpop.permute.xlu0 %981  ;;  %v931_v28 = vadd.f32 %v929_v18, %v890_v50  ;;  %v932_v29 = vadd.f32 %v930_v19, %v891_v51  ;;  %v943_v34 = vpop.permute.xlu1 %942  ;;  %v736_v19 = vadd.f32 %v735_v59, %v727_v57  ;;  %v1079_v57 = vmul.f32 %v3105_v10, %v2989_v43 }
 0x176   : > { %v944_v32 = vsel %vm937_vm5, %v941_v49, %v943_v34  ;;  %v945_v35 = vsel %vm937_vm5, %v943_v34, %v941_v49  ;;  %v999_v49 = vmul.f32 %v3080_v36, %v2958_v23  ;;  %v715_v11 = vmul.f32 %v714_v52, %v652_v56 }
 0x177   : > { %v954_v40 = vmul.f32 %v953_v26, %v945_v35  ;;  %v955_v41 = vmul.f32 %v953_v26, %v944_v32  ;;  %v1040_v26 = vmul.f32 %v3105_v10, %v2960_v25  ;;  %v1032_v32 = vstv %s3094_s24  ;;  %s3223_s24 = sld [smem:[#allocation12 + $0xc]] }
 0x178   : > { %v1004_v2 = vrot.slane %v999_v49, %v2999_v54  ;;  %v1008_v5 = vrot.slane %v999_v49, %v2969_v30  ;;  %v716_v34 = vsel %vm692_vm1, %v715_v11, 0.0  ;;  %v1035_v35 = vstv %s3096_s13  ;;  %s3225_s13 = sld [smem:[#allocation12 + $0x25]] }
 0x179   : > { %v1018_v45 = vpop.permute.xlu0 %1017  ;;  %v956_v46 = vadd.f32 %v954_v40, %v951_v38  ;;  %v957_v47 = vadd.f32 %v955_v41, %v952_v39  ;;  %v977_v48 = vpop.permute.xlu1 %976  ;;  %v1045_v41 = vrot.slane %v1040_v26, %v2999_v54  ;;  %v1049_v44 = vrot.slane %v1040_v26, %v2969_v30 }
 0x17a   : > { %v979_v50 = vsel %vm978_vm6, %v975_v8, %v977_v48  ;;  %v980_v51 = vsel %vm978_vm6, %v977_v48, %v975_v8  ;;  %vm1599_vm5 = vcmp.lt.s32.totalorder %v2948_v17, 98 }
 0x17b   : > { %v970_v53 = vmul.f32 %v963_v31, %v956_v46  ;;  %v971_v55 = vmul.f32 %v967_v33, %v957_v47  ;;  %v992_v12 = vmul.f32 %v991_v60, %v980_v51  ;;  %v993_v13 = vmul.f32 %v991_v60, %v979_v50 }
 0x17d   : > { %v1025_v23 = vpop.permute.xlu0 %1024  ;;  %v972_v62 = vadd.f32 %v970_v53, %v931_v28  ;;  %v973_v63 = vadd.f32 %v971_v55, %v932_v29  ;;  %v984_v7 = vpop.permute.xlu1 %983 }
 0x17e   : > { %v985_v8 = vsel %vm978_vm6, %v982_v27, %v984_v7  ;;  %v986_v9 = vsel %vm978_vm6, %v984_v7, %v982_v27  ;;  %v656_v27 = vld [vmem:[%s3618_s11] sm:$0x1]  ;;  %vm1638_vm6 = vcmp.lt.s32.totalorder %v2948_v17, 97 }
 0x17f   : > { %v995_v14 = vmul.f32 %v994_v61, %v986_v9  ;;  %v996_v16 = vmul.f32 %v994_v61, %v985_v8  ;;  %v737_v38 = vadd.f32 %v736_v19, %v656_v27  ;;  %v1084_v9 = vrot.slane %v1079_v57, %v2999_v54 }
 0x181   : > { %v1057_v18 = vpop.permute.xlu0 %1056  ;;  %v997_v20 = vadd.f32 %v995_v14, %v992_v12  ;;  %v998_v22 = vadd.f32 %v996_v16, %v993_v13  ;;  %v1020_v24 = vpop.permute.xlu1 %1019  ;;  %v738_v52 = vmax.f32 %v737_v38, 0.0  ;;  %v657_v12 = vld [vmem:[%s3619_s12] sm:$0xf]  ;;  %v1088_v13 = vrot.slane %v1079_v57, %v2969_v30 }
 0x182   : > { %v1022_v28 = vsel %vm1021_vm7, %v1018_v45, %v1020_v24  ;;  %v1023_v29 = vsel %vm1021_vm7, %v1020_v24, %v1018_v45 }
 0x183   : > { %v1011_v31 = vmul.f32 %v1004_v2, %v997_v20  ;;  %v1012_v33 = vmul.f32 %v1008_v5, %v998_v22  ;;  %v1033_v47 = vmul.f32 %v1032_v32, %v1023_v29  ;;  %v1034_v48 = vmul.f32 %v1032_v32, %v1022_v28 }
 0x184   : > { %v742_v5 = vrot.slane %v738_v52, %v2999_v54 }
 0x185   : > { %717 = vadd.xlane.f32.xlu0 %v716_v34  ;;  %v1064_v37 = vpop.permute.xlu0 %1063  ;;  %v1013_v39 = vadd.f32 %v1011_v31, %v972_v62  ;;  %v1014_v40 = vadd.f32 %v1012_v33, %v973_v63  ;;  %v1027_v42 = vpop.permute.xlu1 %1026  ;;  %v1071_v62 = vstv %s3119_s3  ;;  %v1074_v63 = vstv %s3121_s18  ;;  %s3183_s3 = sld [smem:[#allocation12 + $0x9]]  ;;  %s3185_s18 = sld [smem:[#allocation12 + $0x22]] }
 0x186   : > { %v1028_v45 = vsel %vm1021_vm7, %v1025_v23, %v1027_v42  ;;  %v1029_v46 = vsel %vm1021_vm7, %v1027_v42, %v1025_v23  ;;  %v743_v24 = vmul.f32 %v742_v5, %v657_v12  ;;  %v1118_v31 = vmul.f32 %v3105_v10, %v3032_v21 }
 0x187   : > { %v1036_v49 = vmul.f32 %v1035_v35, %v1029_v46  ;;  %v1037_v50 = vmul.f32 %v1035_v35, %v1028_v45  ;;  %vm1677_vm7 = vcmp.lt.s32.totalorder %v2948_v17, 96 }
 0x188   : > { %v744_v38 = vsel %vm692_vm1, %v743_v24, 0.0  ;;  %v1127_v46 = vrot.slane %v1118_v31, %v2969_v30  ;;  %vm1441_vm1 = vcmp.lt.s32.totalorder %v2948_v17, 113 }
 0x189   : > { %v1096_v51 = vpop.permute.xlu0 %1095  ;;  %v1038_v53 = vadd.f32 %v1036_v49, %v1033_v47  ;;  %v1039_v55 = vadd.f32 %v1037_v50, %v1034_v48  ;;  %v1059_v56 = vpop.permute.xlu1 %1058 }
 0x18a   : > { %v1061_v59 = vsel %vm1060_vm8, %v1057_v18, %v1059_v56  ;;  %v1062_v60 = vsel %vm1060_vm8, %v1059_v56, %v1057_v18 }
 0x18b   : > { %v1052_v61 = vmul.f32 %v1045_v41, %v1038_v53  ;;  %v1053_v23 = vmul.f32 %v1049_v44, %v1039_v55  ;;  %v1072_v18 = vmul.f32 %v1071_v62, %v1062_v60  ;;  %v1073_v19 = vmul.f32 %v1071_v62, %v1061_v59 }
 0x18c   : > { %v1123_v44 = vrot.slane %v1118_v31, %v2999_v54  ;;  %v1157_v59 = vmul.f32 %v3105_v10, %v3057_v58 }
 0x18d   : > { %v1103_v2 = vpop.permute.xlu0 %1102  ;;  %v1054_v7 = vadd.f32 %v1052_v61, %v1013_v39  ;;  %v1055_v8 = vadd.f32 %v1053_v23, %v1014_v40  ;;  %v1066_v11 = vpop.permute.xlu1 %1065  ;;  %v1113_v39 = vstv %s3141_s22  ;;  %s2509_s22 = smov 97  }
 0x18e   : > { %v1067_v14 = vsel %vm1060_vm8, %v1064_v37, %v1066_v11  ;;  %v1068_v16 = vsel %vm1060_vm8, %v1066_v11, %v1064_v37  ;;  %v1110_v37 = vstv %s3138_s25  ;;  %v1166_v12 = vrot.slane %v1157_v59, %v2969_v30  ;;  %s3208_s25 = sld [smem:[#allocation12 + $0x23]] }
 0x18f   : > { %v1075_v20 = vmul.f32 %v1074_v63, %v1068_v16  ;;  %v1076_v22 = vmul.f32 %v1074_v63, %v1067_v14  ;;  %v1149_v63 = vstv %s3162_s8  ;;  %s3242_s8 = sld [smem:[#allocation12 + $0x24]]  ;;  %vm1716_vm8 = vcmp.lt.s32.totalorder %v2948_v17, 95 }
 0x191   : > { %v1135_v26 = vpop.permute.xlu0 %1134  ;;  %v1077_v27 = vadd.f32 %v1075_v20, %v1072_v18  ;;  %v1078_v28 = vadd.f32 %v1076_v22, %v1073_v19  ;;  %v1098_v29 = vpop.permute.xlu1 %1097 }
 0x192   : > { %v1100_v33 = vsel %vm1099_vm9, %v1096_v51, %v1098_v29  ;;  %v1101_v34 = vsel %vm1099_vm9, %v1098_v29, %v1096_v51 }
 0x193   : > { %v1091_v32 = vmul.f32 %v1084_v9, %v1077_v27  ;;  %v1092_v35 = vmul.f32 %v1088_v13, %v1078_v28  ;;  %v1111_v49 = vmul.f32 %v1110_v37, %v1101_v34  ;;  %v1112_v50 = vmul.f32 %v1110_v37, %v1100_v33 }
 0x194   : > { %v1162_v9 = vrot.slane %v1157_v59, %v2999_v54  ;;  %v1196_v28 = vmul.f32 %v3105_v10, %v3080_v36 }
 0x195   : > { %v1142_v40 = vpop.permute.xlu0 %1141  ;;  %v1093_v41 = vadd.f32 %v1091_v32, %v1054_v7  ;;  %v1094_v42 = vadd.f32 %v1092_v35, %v1055_v8  ;;  %745 = vadd.xlane.f32.xlu1 %v744_v38  ;;  %v1105_v45 = vpop.permute.xlu1 %1104  ;;  %v1188_v32 = vstv %s3183_s3  ;;  %v1191_v35 = vstv %s3185_s18  ;;  %s3271_s3 = sld [smem:[#allocation12 + $0xd]]  ;;  %s3277_s18 = sld [smem:[#allocation12 + $0x26]] }
 0x196   : > { %v1106_v47 = vsel %vm1099_vm9, %v1103_v2, %v1105_v45  ;;  %v1107_v48 = vsel %vm1099_vm9, %v1105_v45, %v1103_v2  ;;  %v1152_v2 = vstv %s3164_s23  ;;  %s2510_s23 = smov 96   ;;  %vm1755_vm9 = vcmp.lt.s32.totalorder %v2948_v17, 94 }
 0x197   : > { %v1114_v51 = vmul.f32 %v1113_v39, %v1107_v48  ;;  %v1115_v52 = vmul.f32 %v1113_v39, %v1106_v47  ;;  %v1201_v39 = vrot.slane %v1196_v28, %v2999_v54 }
 0x199   : > { %v1174_v53 = vpop.permute.xlu0 %1173  ;;  %v1116_v55 = vadd.f32 %v1114_v51, %v1111_v49  ;;  %v1117_v56 = vadd.f32 %v1115_v52, %v1112_v50  ;;  %v1137_v57 = vpop.permute.xlu1 %1136 }
 0x19a   : > { %v1139_v60 = vsel %vm1138_vm10, %v1135_v26, %v1137_v57  ;;  %v1140_v61 = vsel %vm1138_vm10, %v1137_v57, %v1135_v26 }
 0x19b   : > { %1561 = vrot.lane.b32.xlu0 %v2871_v0, %s2507_s0  ;;  %v1130_v23 = vmul.f32 %v1123_v44, %v1116_v55  ;;  %v1131_v62 = vmul.f32 %v1127_v46, %v1117_v56  ;;  %v1150_v16 = vmul.f32 %v1149_v63, %v1140_v61  ;;  %v1151_v18 = vmul.f32 %v1149_v63, %v1139_v60  ;;  %s3206_s0 = sld [smem:[#allocation12 + $0xa]] }
 0x19d   : > { %v1181_v5 = vpop.permute.xlu0 %1180  ;;  %v1132_v7 = vadd.f32 %v1130_v23, %v1093_v41  ;;  %v1133_v8 = vadd.f32 %v1131_v62, %v1094_v42  ;;  %v1144_v11 = vpop.permute.xlu1 %1143  ;;  %v3211_v41 = vld [vmem:[#allocation9 + $0x2] ss:$8 sm:$0x3]  ;;  %v1205_v42 = vrot.slane %v1196_v28, %v2969_v30  ;;  %v1232_v23 = vstv %s3208_s25  ;;  %s3303_s25 = sld [smem:[#allocation12 + $0xe]] }
 0x19e   : > { %v1145_v13 = vsel %vm1138_vm10, %v1142_v40, %v1144_v11  ;;  %v1146_v14 = vsel %vm1138_vm10, %v1144_v11, %v1142_v40  ;;  %v1237_v50 = vmul.f32 %v3211_v41, %v2960_v25 }
 0x19f   : > { %1595 = vrot.lane.b32.xlu0 %v2873_v3, %s2508_s2  ;;  %v1153_v19 = vmul.f32 %v1152_v2, %v1146_v14  ;;  %v1154_v20 = vmul.f32 %v1152_v2, %v1145_v13  ;;  %v1297_v13 = vstv %s3225_s13  ;;  %s3330_s13 = sld [smem:[#allocation12 + $0xf]] }
 0x1a0   : > { %v1242_v62 = vrot.slane %v1237_v50, %v2999_v54 }
 0x1a1   : > { %v1215_v22 = vpop.permute.xlu0 %1214  ;;  %v1155_v24 = vadd.f32 %v1153_v19, %v1150_v16  ;;  %v1156_v26 = vadd.f32 %v1154_v20, %v1151_v18  ;;  %v1176_v27 = vpop.permute.xlu1 %1175  ;;  %v1229_v61 = vstv %s3206_s0  ;;  %v1276_v20 = vmul.f32 %v3211_v41, %v2989_v43  ;;  %s2511_s0 = smov 95  }
 0x1a2   : > { %v1178_v29 = vsel %vm1177_vm11, %v1174_v53, %v1176_v27  ;;  %v1179_v31 = vsel %vm1177_vm11, %v1176_v27, %v1174_v53 }
 0x1a3   : > { %1602 = vrot.lane.b32.xlu0 %v2871_v0, %s2508_s2  ;;  %v1169_v33 = vmul.f32 %v1162_v9, %v1155_v24  ;;  %v1170_v34 = vmul.f32 %v1166_v12, %v1156_v26  ;;  %v1189_v46 = vmul.f32 %v1188_v32, %v1179_v31  ;;  %v1190_v47 = vmul.f32 %v1188_v32, %v1178_v29 }
 0x1a4   : > { %v1294_v12 = vstv %s3223_s24  ;;  %v1299_v29 = vmul.f32 %v1297_v13, %v2878_v6  ;;  %s2512_s24 = smov 94  }
 0x1a5   : > { %v1222_v37 = vpop.permute.xlu0 %1221  ;;  %v1171_v38 = vadd.f32 %v1169_v33, %v1132_v7  ;;  %v1172_v10 = vadd.f32 %v1170_v34, %v1133_v8  ;;  %v1183_v40 = vpop.permute.xlu1 %1182  ;;  %v1246_v7 = vrot.slane %v1237_v50, %v2969_v30  ;;  %v1296_v28 = vmul.f32 %v1294_v12, %v2875_v4 }
 0x1a6   : > { %v1184_v44 = vsel %vm1177_vm11, %v1181_v5, %v1183_v40  ;;  %v1185_v45 = vsel %vm1177_vm11, %v1183_v40, %v1181_v5  ;;  %1604 = vrot.lane.b32.xlu1 %v2878_v6, %s2508_s2  ;;  %s3237_s2 = sld [smem:[#allocation12 + $0xb]]  ;;  %v1302_v34 = vmul.f32 %v3211_v41, %v3032_v21  ;;  %v1295_v40 = vmul.f32 %v1294_v12, %v2873_v3 }
 0x1a7   : > { %1634 = vrot.lane.b32.xlu0 %v2873_v3, %s2509_s22  ;;  %v1192_v48 = vmul.f32 %v1191_v35, %v1185_v45  ;;  %v1193_v49 = vmul.f32 %v1191_v35, %v1184_v44 }
 0x1a9   : > { %v1254_v51 = vpop.permute.xlu0 %1253  ;;  %v1194_v52 = vadd.f32 %v1192_v48, %v1189_v46  ;;  %v1195_v53 = vadd.f32 %v1193_v49, %v1190_v47  ;;  %v1217_v55 = vpop.permute.xlu1 %1216  ;;  %v1285_v46 = vrot.slane %v1276_v20, %v2969_v30  ;;  %v1301_v48 = vadd.f32 %v1299_v29, %v1296_v28 }
 0x1aa   : > { %v1219_v56 = vsel %vm1218_vm12, %v1215_v22, %v1217_v55  ;;  %v1220_v57 = vsel %vm1218_vm12, %v1217_v55, %v1215_v22  ;;  %1636 = vrot.lane.b32.xlu1 %v2875_v4, %s2509_s22 }
 0x1ab   : > { %1641 = vrot.lane.b32.xlu0 %v2871_v0, %s2509_s22  ;;  %v1208_v59 = vmul.f32 %v1201_v39, %v1194_v52  ;;  %v1209_v60 = vmul.f32 %v1205_v42, %v1195_v53  ;;  %v1230_v14 = vmul.f32 %v1229_v61, %v1220_v57  ;;  %v1231_v16 = vmul.f32 %v1229_v61, %v1219_v56 }
 0x1ac   : > { %v1298_v42 = vmul.f32 %v1297_v13, %v2871_v0  ;;  %v1336_v13 = vstv %s3277_s18  ;;  %s3374_s18 = sld [smem:[#allocation12 + $0x2a]] }
 0x1ad   : > { %v1261_v63 = vpop.permute.xlu0 %1260  ;;  %v1210_v2 = vadd.f32 %v1208_v59, %v1171_v38  ;;  %v1211_v5 = vadd.f32 %v1209_v60, %v1172_v10  ;;  %v1224_v8 = vpop.permute.xlu1 %1223  ;;  %v1271_v38 = vstv %s3242_s8  ;;  %v1281_v10 = vrot.slane %v1276_v20, %v2999_v54  ;;  %s3353_s8 = sld [smem:[#allocation12 + $0x10]] }
 0x1ae   : > { %v1225_v9 = vsel %vm1218_vm12, %v1222_v37, %v1224_v8  ;;  %v1226_v11 = vsel %vm1218_vm12, %v1224_v8, %v1222_v37  ;;  %1643 = vrot.lane.b32.xlu1 %v2878_v6, %s2509_s22  ;;  %v1268_v37 = vstv %s3237_s2  ;;  %v1300_v57 = vadd.f32 %v1298_v42, %v1295_v40  ;;  %s3305_s22 = sld [smem:[#allocation12 + $0x27]]  ;;  %s3332_s2 = sld [smem:[#allocation12 + $0x28]] }
 0x1af   : > { %1673 = vrot.lane.b32.xlu0 %v2873_v3, %s2510_s23  ;;  %v1233_v18 = vmul.f32 %v1232_v23, %v1226_v11  ;;  %v1234_v19 = vmul.f32 %v1232_v23, %v1225_v9  ;;  %v1307_v59 = vrot.slane %v1302_v34, %v2999_v54  ;;  %v1333_v9 = vstv %s3271_s3  ;;  %s3372_s3 = sld [smem:[#allocation12 + $0x11]] }
 0x1b1   : > { %v1319_v22 = vpop.permute.xlu0 %1318  ;;  %v1235_v24 = vadd.f32 %v1233_v18, %v1230_v14  ;;  %v1236_v26 = vadd.f32 %v1234_v19, %v1231_v16  ;;  %v1256_v27 = vpop.permute.xlu1 %1255  ;;  %v1314_v12 = vmul.f32 %v1307_v59, %v1300_v57 }
 0x1b2   : > { %v1258_v31 = vsel %vm1257_vm13, %v1254_v51, %v1256_v27  ;;  %v1259_v33 = vsel %vm1257_vm13, %v1256_v27, %v1254_v51  ;;  %1675 = vrot.lane.b32.xlu1 %v2875_v4, %s2510_s23  ;;  %v1311_v51 = vrot.slane %v1302_v34, %v2969_v30 }
 0x1b3   : > { %1680 = vrot.lane.b32.xlu0 %v2871_v0, %s2510_s23  ;;  %v1249_v32 = vmul.f32 %v1242_v62, %v1235_v24  ;;  %v1250_v35 = vmul.f32 %v1246_v7, %v1236_v26  ;;  %v1269_v52 = vmul.f32 %v1268_v37, %v1259_v33  ;;  %v1270_v53 = vmul.f32 %v1268_v37, %v1258_v31 }
 0x1b4   : > { %v1315_v11 = vmul.f32 %v1311_v51, %v1301_v48 }
 0x1b5   : > { %v1326_v39 = vpop.permute.xlu0 %1325  ;;  %v1251_v44 = vadd.f32 %v1249_v32, %v1210_v2  ;;  %v1252_v45 = vadd.f32 %v1250_v35, %v1211_v5  ;;  %v1263_v47 = vpop.permute.xlu1 %1262 }
 0x1b6   : > { %v1264_v49 = vsel %vm1257_vm13, %v1261_v63, %v1263_v47  ;;  %v1265_v50 = vsel %vm1257_vm13, %v1263_v47, %v1261_v63  ;;  %1682 = vrot.lane.b32.xlu1 %v2878_v6, %s2510_s23  ;;  %v1341_v63 = vmul.f32 %v3211_v41, %v3057_v58  ;;  %s3355_s23 = sld [smem:[#allocation12 + $0x29]] }
 0x1b7   : > { %1712 = vrot.lane.b32.xlu0 %v2873_v3, %s2511_s0  ;;  %v1272_v55 = vmul.f32 %v1271_v38, %v1265_v50  ;;  %v1273_v56 = vmul.f32 %v1271_v38, %v1264_v49  ;;  %v1380_v38 = vmul.f32 %v3211_v41, %v3080_v36 }
 0x1b8   : > { %v1346_v19 = vrot.slane %v1341_v63, %v2999_v54  ;;  %v1350_v20 = vrot.slane %v1341_v63, %v2969_v30 }
 0x1b9   : > { %v1358_v60 = vpop.permute.xlu0 %1357  ;;  %v1274_v61 = vadd.f32 %v1272_v55, %v1269_v52  ;;  %v1275_v23 = vadd.f32 %v1273_v56, %v1270_v53  ;;  %v1321_v62 = vpop.permute.xlu1 %1320  ;;  %v1385_v49 = vrot.slane %v1380_v38, %v2999_v54  ;;  %v1389_v50 = vrot.slane %v1380_v38, %v2969_v30  ;;  %v3341_v52 = vld [vmem:[#allocation9 + $0x3] ss:$8 sm:$0x3] }
 0x1ba   : > { %v1323_v2 = vsel %vm1322_vm14, %v1319_v22, %v1321_v62  ;;  %v1324_v5 = vsel %vm1322_vm14, %v1321_v62, %v1319_v22  ;;  %1714 = vrot.lane.b32.xlu1 %v2875_v4, %s2511_s0  ;;  %v1421_v62 = vmul.f32 %v3341_v52, %v2960_v25 }
 0x1bb   : > { %1719 = vrot.lane.b32.xlu0 %v2871_v0, %s2511_s0  ;;  %v1288_v7 = vmul.f32 %v1281_v10, %v1274_v61  ;;  %v1289_v8 = vmul.f32 %v1285_v46, %v1275_v23  ;;  %v1334_v24 = vmul.f32 %v1333_v9, %v1323_v2  ;;  %v1335_v28 = vmul.f32 %v1333_v9, %v1324_v5 }
 0x1bc   : > { %v1375_v46 = vstv %s3305_s22  ;;  %v1455_v38 = vstv %s3355_s23  ;;  %s2080_s22 = sld [smem:[#allocation12 + $0x13]]  ;;  %s3481_s23 = sld [smem:[#allocation12 + $0x30]] }
 0x1bd   : > { %v1365_v14 = vpop.permute.xlu0 %1364  ;;  %v1290_v16 = vadd.f32 %v1288_v7, %v1251_v44  ;;  %v1291_v18 = vadd.f32 %v1289_v8, %v1252_v45  ;;  %v1328_v22 = vpop.permute.xlu1 %1327  ;;  %v2513_v44 = vmov 0   ;;  %v1372_v45 = vstv %s3303_s25  ;;  %s3393_s25 = sld [smem:[#allocation12 + $0x2b]] }
 0x1be   : > { %v1329_v26 = vsel %vm1322_vm14, %v1326_v39, %v1328_v22  ;;  %v1330_v27 = vsel %vm1322_vm14, %v1328_v22, %v1326_v39  ;;  %1721 = vrot.lane.b32.xlu1 %v2878_v6, %s2511_s0  ;;  %2221 = vset.pattern.permute.xlu0 %v2513_v44  ;;  %v1416_v8 = vstv %s3332_s2  ;;  %s3391_s0 = sld [smem:[#allocation12 + $0x12]]  ;;  %s2083_s2 = sld [smem:[#allocation12 + $0x2d]] }
 0x1bf   : > { %1751 = vrot.lane.b32.xlu0 %v2873_v3, %s2512_s24  ;;  %v1317_v29 = vadd.f32 %v1315_v11, %v1291_v18  ;;  %v1337_v31 = vmul.f32 %v1336_v13, %v1329_v26  ;;  %v1338_v33 = vmul.f32 %v1336_v13, %v1330_v27  ;;  %v1316_v3 = vadd.f32 %v1314_v12, %v1290_v16 }
 0x1c0   : > { %v1426_v13 = vrot.slane %v1421_v62, %v2999_v54 }
 0x1c1   : > { %v1399_v34 = vpop.permute.xlu0 %1398  ;;  %v1339_v32 = vadd.f32 %v1337_v31, %v1334_v24  ;;  %v1340_v35 = vadd.f32 %v1338_v33, %v1335_v28  ;;  %v1360_v37 = vpop.permute.xlu1 %1359  ;;  %v1460_v31 = vmul.f32 %v3341_v52, %v2989_v43 }
 0x1c2   : > { %v1362_v10 = vsel %vm1361_vm15, %v1358_v60, %v1360_v37  ;;  %v1363_v39 = vsel %vm1361_vm15, %v1360_v37, %v1358_v60  ;;  %1753 = vrot.lane.b32.xlu1 %v2875_v4, %s2512_s24  ;;  %v1452_v37 = vstv %s3353_s8  ;;  %s3478_s8 = sld [smem:[#allocation12 + $0x17]] }
 0x1c3   : > { %1758 = vrot.lane.b32.xlu0 %v2871_v0, %s2512_s24  ;;  %v1353_v40 = vmul.f32 %v1346_v19, %v1339_v32  ;;  %v1354_v42 = vmul.f32 %v1350_v20, %v1340_v35  ;;  %v1373_v53 = vmul.f32 %v1372_v45, %v1362_v10  ;;  %v1374_v55 = vmul.f32 %v1372_v45, %v1363_v39 }
 0x1c5   : > { %v1406_v41 = vpop.permute.xlu0 %1405  ;;  %v1355_v47 = vadd.f32 %v1353_v40, %v1316_v3  ;;  %v1356_v48 = vadd.f32 %v1354_v42, %v1317_v29  ;;  %v1367_v4 = vpop.permute.xlu1 %1366  ;;  %v1465_v3 = vrot.slane %v1460_v31, %v2999_v54  ;;  %v1469_v42 = vrot.slane %v1460_v31, %v2969_v30 }
 0x1c6   : > { %v1368_v0 = vsel %vm1361_vm15, %v1365_v14, %v1367_v4  ;;  %v1369_v51 = vsel %vm1361_vm15, %v1367_v4, %v1365_v14  ;;  %1760 = vrot.lane.b32.xlu1 %v2878_v6, %s2512_s24  ;;  %v1413_v6 = vstv %s3330_s13  ;;  %v1430_v14 = vrot.slane %v1421_v62, %v2969_v30  ;;  %s2081_s24 = sld [smem:[#allocation12 + $0x2c]] }
 0x1c7   : > { %v1376_v56 = vmul.f32 %v1375_v46, %v1368_v0  ;;  %v1377_v57 = vmul.f32 %v1375_v46, %v1369_v51  ;;  %v1499_v0 = vmul.f32 %v3341_v52, %v3032_v21  ;;  %s2082_s13 = sld [smem:[#allocation12 + $0x14]] }
 0x1c9   : > { %v1438_v59 = vpop.permute.xlu0 %1437  ;;  %v1378_v60 = vadd.f32 %v1376_v56, %v1373_v53  ;;  %v1379_v61 = vadd.f32 %v1377_v57, %v1374_v55  ;;  %v1401_v23 = vpop.permute.xlu1 %1400  ;;  %v1504_v62 = vrot.slane %v1499_v0, %v2999_v54 }
 0x1ca   : > { %v1403_v63 = vsel %vm1402_vm0, %v1399_v34, %v1401_v23  ;;  %v1404_v2 = vsel %vm1402_vm0, %v1401_v23, %v1399_v34 }
 0x1cb   : > { %v1392_v5 = vmul.f32 %v1385_v49, %v1378_v60  ;;  %v1393_v7 = vmul.f32 %v1389_v50, %v1379_v61  ;;  %v1414_v19 = vmul.f32 %v1413_v6, %v1403_v63  ;;  %v1415_v20 = vmul.f32 %v1413_v6, %v1404_v2 }
 0x1cc   : > { %v1494_v60 = vstv %s3374_s18  ;;  %v1508_v63 = vrot.slane %v1499_v0, %v2969_v30  ;;  %s3499_s18 = sld [smem:[#allocation12 + $0x31]] }
 0x1cd   : > { %v1445_v9 = vpop.permute.xlu0 %1444  ;;  %v1394_v11 = vadd.f32 %v1392_v5, %v1355_v47  ;;  %v1395_v12 = vadd.f32 %v1393_v7, %v1356_v48  ;;  %v1408_v25 = vpop.permute.xlu1 %1407 }
 0x1ce   : > { %v1409_v16 = vsel %vm1402_vm0, %v1406_v41, %v1408_v25  ;;  %v1410_v18 = vsel %vm1402_vm0, %v1408_v25, %v1406_v41 }
 0x1cf   : > { %v1417_v22 = vmul.f32 %v1416_v8, %v1409_v16  ;;  %v1418_v24 = vmul.f32 %v1416_v8, %v1410_v18 }
 0x1d1   : > { %v1477_v26 = vpop.permute.xlu0 %1476  ;;  %v1419_v27 = vadd.f32 %v1417_v22, %v1414_v19  ;;  %v1420_v28 = vadd.f32 %v1418_v24, %v1415_v20  ;;  %v1440_v29 = vpop.permute.xlu1 %1439  ;;  %v1530_v22 = vstv %s3391_s0  ;;  %v1533_v24 = vstv %s3393_s25  ;;  %s3667_s25 = sld [smem:[#allocation30_spill]] }
 0x1d2   : > { %v1442_v33 = vsel %vm1441_vm1, %v1438_v59, %v1440_v29  ;;  %v1443_v34 = vsel %vm1441_vm1, %v1440_v29, %v1438_v59  ;;  %v1491_v59 = vstv %s3372_s3  ;;  %s3666_s3 = sld [smem:[#allocation29_spill]]  ;;  %s659_s0 = sld [smem:[#allocation2]] }
 0x1d3   : > { %v1433_v32 = vmul.f32 %v1426_v13, %v1419_v27  ;;  %v1434_v35 = vmul.f32 %v1430_v14, %v1420_v28  ;;  %v1453_v46 = vmul.f32 %v1452_v37, %v1442_v33  ;;  %v1454_v41 = vmul.f32 %v1452_v37, %v1443_v34 }
 0x1d4   : > { %v1538_v14 = vmul.f32 %v3341_v52, %v3057_v58 }
 0x1d5   : > { %v1435_v10 = vadd.f32 %v1433_v32, %v1394_v11  ;;  %v1436_v39 = vadd.f32 %v1434_v35, %v1395_v12  ;;  %v1447_v40 = vpop.permute.xlu1 %1446  ;;  %v1484_v43 = vpop.permute.xlu0 %1483 }
 0x1d6   : > { %v1448_v44 = vsel %vm1441_vm1, %v1445_v9, %v1447_v40  ;;  %v1449_v45 = vsel %vm1441_vm1, %v1447_v40, %v1445_v9  ;;  %v1543_v28 = vrot.slane %v1538_v14, %v2999_v54  ;;  %v1547_v31 = vrot.slane %v1538_v14, %v2969_v30 }
 0x1d7   : > { %v1456_v47 = vmul.f32 %v1455_v38, %v1448_v44  ;;  %v1457_v48 = vmul.f32 %v1455_v38, %v1449_v45 }
 0x1d9   : > { %v1458_v49 = vadd.f32 %v1456_v47, %v1453_v46  ;;  %v1459_v4 = vadd.f32 %v1457_v48, %v1454_v41  ;;  %v1479_v50 = vpop.permute.xlu1 %1478  ;;  %v1516_v57 = vpop.permute.xlu0 %1515  ;;  %v1577_v47 = vmul.f32 %v3341_v52, %v3080_v36 }
 0x1da   : > { %v1481_v51 = vsel %vm1480_vm2, %v1477_v26, %v1479_v50  ;;  %v1482_v53 = vsel %vm1480_vm2, %v1479_v50, %v1477_v26 }
 0x1db   : > { %v1472_v55 = vmul.f32 %v1465_v3, %v1458_v49  ;;  %v1473_v56 = vmul.f32 %v1469_v42, %v1459_v4  ;;  %v1492_v7 = vmul.f32 %v1491_v59, %v1481_v51  ;;  %v1493_v6 = vmul.f32 %v1491_v59, %v1482_v53 }
 0x1dc   : > { %v1569_v49 = vstv %s2080_s22  ;;  %v1572_v4 = vstv %s2081_s24  ;;  %v1582_v50 = vrot.slane %v1577_v47, %v2999_v54  ;;  %v1586_v51 = vrot.slane %v1577_v47, %v2969_v30  ;;  %s3443_s22 = sld [smem:[#allocation12 + $0x15]]  ;;  %s3445_s24 = sld [smem:[#allocation12 + $0x2e]] }
 0x1dd   : > { %v1474_v61 = vadd.f32 %v1472_v55, %v1435_v10  ;;  %v1475_v23 = vadd.f32 %v1473_v56, %v1436_v39  ;;  %v1486_v21 = vpop.permute.xlu1 %1485  ;;  %v1523_v25 = vpop.permute.xlu0 %1522 }
 0x1de   : > { %v1487_v2 = vsel %vm1480_vm2, %v1484_v43, %v1486_v21  ;;  %v1488_v5 = vsel %vm1480_vm2, %v1486_v21, %v1484_v43 }
 0x1df   : > { %v1495_v8 = vmul.f32 %v1494_v60, %v1487_v2  ;;  %v1496_v9 = vmul.f32 %v1494_v60, %v1488_v5 }
 0x1e1   : > { %v1497_v11 = vadd.f32 %v1495_v8, %v1492_v7  ;;  %v1498_v12 = vadd.f32 %v1496_v9, %v1493_v6  ;;  %v1518_v13 = vpop.permute.xlu1 %1517  ;;  %v1555_v38 = vpop.permute.xlu0 %1554  ;;  %v3434_v8 = vld [vmem:[#allocation9 + $0x4] ss:$8 sm:$0x3]  ;;  %v653_v9 = vld [vmem:[%s3666_s3] sm:$0xf]  ;;  %s3496_s3 = sld [smem:[#allocation12 + $0x18]] }
 0x1e2   : > { %v1520_v16 = vsel %vm1519_vm3, %v1516_v57, %v1518_v13  ;;  %v1521_v18 = vsel %vm1519_vm3, %v1518_v13, %v1516_v57  ;;  %v1652_v47 = vstv %s3445_s24 }
 0x1e3   : > { %v1511_v19 = vmul.f32 %v1504_v62, %v1497_v11  ;;  %v1512_v20 = vmul.f32 %v1508_v63, %v1498_v12  ;;  %v1531_v34 = vmul.f32 %v1530_v22, %v1520_v16  ;;  %v1532_v32 = vmul.f32 %v1530_v22, %v1521_v18  ;;  %v658_v11 = vld [vmem:[%s3667_s25] sm:$0xf]  ;;  %s2102_s25 = sshll.u32 %s2630_s30, 7 }
 0x1e4   : > { %v1613_v22 = vstv %s2083_s2  ;;  %s3463_s2 = sld [smem:[#allocation12 + $0x2f]] }
 0x1e5   : > { %v1513_v26 = vadd.f32 %v1511_v19, %v1474_v61  ;;  %v1514_v27 = vadd.f32 %v1512_v20, %v1475_v23  ;;  %v1525_v29 = vpop.permute.xlu1 %1524  ;;  %v1610_v19 = vstv %s2082_s13  ;;  %s3455_s13 = sld [smem:[#allocation12 + $0x16]] }
 0x1e6   : > { %v1526_v58 = vsel %vm1519_vm3, %v1523_v25, %v1525_v29  ;;  %v1527_v33 = vsel %vm1519_vm3, %v1525_v29, %v1523_v25  ;;  %v2236_v25 = vld [vmem:[#allocation7] ss:$8 sm:$0x3] }
 0x1e7   : > { %v1534_v35 = vmul.f32 %v1533_v24, %v1526_v58  ;;  %v1535_v37 = vmul.f32 %v1533_v24, %v1527_v33  ;;  %v1618_v14 = vmul.f32 %v2236_v25, %v3434_v8 }
 0x1e9   : > { %v1536_v10 = vadd.f32 %v1534_v35, %v1531_v34  ;;  %v1537_v39 = vadd.f32 %v1535_v37, %v1532_v32  ;;  %v1557_v3 = vpop.permute.xlu1 %1556 }
 0x1ea   : > { %v1559_v40 = vsel %vm1558_vm4, %v1555_v38, %v1557_v3  ;;  %v1560_v43 = vsel %vm1558_vm4, %v1557_v3, %v1555_v38  ;;  %v1649_v3 = vstv %s3443_s22  ;;  %s636_s22 = scalar_lea.vmem [#allocation13], %s2825_s14 }
 0x1eb   : > { %v1550_v42 = vmul.f32 %v1543_v28, %v1536_v10  ;;  %v1551_v44 = vmul.f32 %v1547_v31, %v1537_v39  ;;  %v1570_v56 = vmul.f32 %v1569_v49, %v1559_v40  ;;  %v1571_v57 = vmul.f32 %v1569_v49, %v1560_v43  ;;  %s1854_s24 = sshll.u32 %s636_s22, 4  ;;  %s3536_s24 = int_to_ptr.vmem [resolvable:$true] %s1854_s24 }
 0x1ed   : > { %v1552_v45 = vadd.f32 %v1550_v42, %v1513_v26  ;;  %v1553_v46 = vadd.f32 %v1551_v44, %v1514_v27  ;;  %v1564_v48 = vpop.permute.xlu1 %1563  ;;  %v1623_v26 = vrot.slane %v1618_v14, %v2999_v54  ;;  %v1627_v27 = vrot.slane %v1618_v14, %v2969_v30  ;;  %v2237_v44 = vld [vmem:[#allocation7 + $0x1] ss:$8 sm:$0x3] }
 0x1f1   : > { %v1598_v52 = vpop.permute.xlu1 %1597 }
 0x212   : > { %v718_v41 = vpop.xlane.xlu0 %717 }
 0x213   : > { %v719_v16 = vadd.f32 %v718_v41, %v653_v9 }
 0x216   : > { %v1562_v0 = vpop.permute.xlu0 %1561 }
 0x217   : > { %v1565_v53 = vsel %vm1558_vm4, %v1562_v0, %v1564_v48  ;;  %v1566_v55 = vsel %vm1558_vm4, %v1564_v48, %v1562_v0 }
 0x218   : > { %v1573_v59 = vmul.f32 %v1572_v4, %v1565_v53  ;;  %v1574_v36 = vmul.f32 %v1572_v4, %v1566_v55 }
 0x21a   : > { %v1575_v60 = vadd.f32 %v1573_v59, %v1570_v56  ;;  %v1576_v61 = vadd.f32 %v1574_v36, %v1571_v57  ;;  %v1596_v23 = vpop.permute.xlu0 %1595 }
 0x21b   : > { %v1600_v62 = vsel %vm1599_vm5, %v1596_v23, %v1598_v52  ;;  %v1601_v21 = vsel %vm1599_vm5, %v1598_v52, %v1596_v23 }
 0x21c   : > { %v1589_v63 = vmul.f32 %v1582_v50, %v1575_v60  ;;  %v1590_v2 = vmul.f32 %v1586_v51, %v1576_v61  ;;  %v1611_v33 = vmul.f32 %v1610_v19, %v1600_v62  ;;  %v1612_v34 = vmul.f32 %v1610_v19, %v1601_v21 }
 0x21d   : > { %v1688_v61 = vstv %s3455_s13  ;;  %s643_s13 = scalar_lea.vmem [#allocation14], %s2825_s14  ;;  %s1835_s14 = scalar_lea.sflag [#allocation5], %s2822_s6 }
 0x21e   : > { %v1591_v5 = vadd.f32 %v1589_v63, %v1552_v45  ;;  %v1592_v7 = vadd.f32 %v1590_v2, %v1553_v46  ;;  %v1603_v6 = vpop.permute.xlu0 %1602  ;;  %v1657_v45 = vmul.f32 %v2237_v44, %v3434_v8  ;;  %v2238_v2 = vld [vmem:[#allocation7 + $0x2] ss:$8 sm:$0x3] }
 0x220   : > { %v1662_v53 = vrot.slane %v1657_v45, %v2999_v54  ;;  %v1666_v57 = vrot.slane %v1657_v45, %v2969_v30 }
 0x222   : > { %v1635_v12 = vpop.permute.xlu0 %1634  ;;  %v746_v13 = vpop.xlane.xlu1 %745 }
 0x223   : > { %v747_v18 = vadd.f32 %v746_v13, %v658_v11 }
 0x225   : > { %v748_v20 = vadd.f32 %v747_v18, %v719_v16 }
 0x226   : > { %v1642_v24 = vpop.permute.xlu0 %1641  ;;  %v1605_v28 = vpop.permute.xlu1 %1604 }
 0x227   : > { %v749_v29 = vsub.f32 0.0, %v748_v20  ;;  %v1606_v31 = vsel %vm1599_vm5, %v1603_v6, %v1605_v28  ;;  %v1607_v58 = vsel %vm1599_vm5, %v1605_v28, %v1603_v6 }
 0x228   : > { %v1614_v32 = vmul.f32 %v1613_v22, %v1606_v31  ;;  %v1615_v35 = vmul.f32 %v1613_v22, %v1607_v58 }
 0x229   : > { %v750_v37 = vmul.f32 1.442695, %v749_v29 }
 0x22a   : > { %v1674_v38 = vpop.permute.xlu0 %1673  ;;  %v1616_v10 = vadd.f32 %v1614_v32, %v1611_v33  ;;  %v1617_v39 = vadd.f32 %v1615_v35, %v1612_v34  ;;  %v1637_v40 = vpop.permute.xlu1 %1636  ;;  %v1727_v33 = vstv %s3478_s8  ;;  %v2239_v35 = vld [vmem:[#allocation7 + $0x3] ss:$8 sm:$0x3]  ;;  %s2372_s8 = scalar_lea.vmem %s3536_s24, 128 }
 0x22b   : > { %2224 = vpow2.f32 %v750_v37  ;;  %v1639_v43 = vsel %vm1638_vm6, %v1635_v12, %v1637_v40  ;;  %v1640_v42 = vsel %vm1638_vm6, %v1637_v40, %v1635_v12  ;;  %v1691_v12 = vstv %s3463_s2  ;;  %s1868_s2 = sshll.u32 %s643_s13, 4  ;;  %p2373_p5 = scmp.ne.s32.totalorder %s3536_s24, %s2372_s8  ;;  %s3543_s2 = int_to_ptr.vmem [resolvable:$true] %s1868_s2 }
 0x22c   : > { %v1630_v46 = vmul.f32 %v1623_v26, %v1616_v10  ;;  %v1631_v41 = vmul.f32 %v1627_v27, %v1617_v39  ;;  %v1650_v50 = vmul.f32 %v1649_v3, %v1639_v43  ;;  %v1651_v0 = vmul.f32 %v1649_v3, %v1640_v42 }
 0x22d   : > { %v1735_v37 = vmul.f32 %v2239_v35, %v3434_v8  ;;  %v1730_v39 = vstv %s3481_s23  ;;  %p2374_p11 = pnand %p2373_p5, %p3670_p8  ;;  %s2514_s23 = smov [#allocation13]  }
 0x22e   : > { %v1681_v48 = vpop.permute.xlu0 %1680  ;;  %v1632_v49 = vadd.f32 %v1630_v46, %v1591_v5  ;;  %v1633_v4 = vadd.f32 %v1631_v41, %v1592_v7  ;;  %v1644_v51 = vpop.permute.xlu1 %1643  ;;  %v1696_v5 = vmul.f32 %v2238_v2, %v3434_v8  ;;  %s2376_s4 = sshll.u32 %s2514_s23, 4  ;;  %s2377_s4 = int_to_ptr.vmem [resolvable:$false] %s2376_s4 }
 0x22f   : > { %v1645_v55 = vsel %vm1638_vm6, %v1642_v24, %v1644_v51  ;;  %v1646_v56 = vsel %vm1638_vm6, %v1644_v51, %v1642_v24  ;;  %v1740_v46 = vrot.slane %v1735_v37, %v2999_v54  ;;  %p2375_p13 = pneg %p2374_p11  ;;  %s2378_s5 = scalar_lea.vmem %s2377_s4, 256 }
 0x230   : > { %v1653_v59 = vmul.f32 %v1652_v47, %v1645_v55  ;;  %v1654_v36 = vmul.f32 %v1652_v47, %v1646_v56  ;;  %v1701_v19 = vrot.slane %v1696_v5, %v2999_v54  ;;  %v1705_v20 = vrot.slane %v1696_v5, %v2969_v30  ;;  %p2379_p0 = scmp.lt.s32.totalorder %s3536_s24, %s2377_s4  ;;  %p2380_p2 = scmp.lt.s32.totalorder %s2378_s5, %s2372_s8 }
 0x231   : > { %v1766_v55 = vstv %s3496_s3  ;;  %s3668_s3 = sld [smem:[#allocation32_spill]] }
 0x232   : > { %v1655_v52 = vadd.f32 %v1653_v59, %v1650_v50  ;;  %v1656_v60 = vadd.f32 %v1654_v36, %v1651_v0  ;;  %v1676_v23 = vpop.permute.xlu1 %1675  ;;  %v1713_v62 = vpop.permute.xlu0 %1712  ;;  %p2381_p1 = por %p2380_p2, %p2379_p0 }
 0x233   : > { %v1678_v21 = vsel %vm1677_vm7, %v1674_v38, %v1676_v23  ;;  %v1679_v63 = vsel %vm1677_vm7, %v1676_v23, %v1674_v38  ;;  %v1769_v23 = vstv %s3499_s18 }
 0x234   : > { %v1669_v7 = vmul.f32 %v1662_v53, %v1655_v52  ;;  %v1670_v6 = vmul.f32 %v1666_v57, %v1656_v60  ;;  %v1689_v11 = vmul.f32 %v1688_v61, %v1678_v21  ;;  %v1690_v16 = vmul.f32 %v1688_v61, %v1679_v63  ;;  %v2240_v60 = vld [vmem:[#allocation7 + $0x4] ss:$8 sm:$0x3]  ;;  %p2382_p6 = pnand %p2381_p1, %p2375_p13 }
 0x235   : > { %v2225_v9 = vpop.eup %2224  ;;  %v1774_v61 = vmul.f32 %v2240_v60, %v3434_v8 }
 0x236   : > { %v752_v13 = vadd.f32 1.0, %v2225_v9  ;;  %v1671_v25 = vadd.f32 %v1669_v7, %v1632_v49  ;;  %v1672_v14 = vadd.f32 %v1670_v6, %v1633_v4  ;;  %v1683_v18 = vpop.permute.xlu1 %1682  ;;  %v1720_v28 = vpop.permute.xlu0 %1719 }
 0x237   : > { %v1684_v22 = vsel %vm1677_vm7, %v1681_v48, %v1683_v18  ;;  %v1685_v24 = vsel %vm1677_vm7, %v1683_v18, %v1681_v48  ;;  %v1744_v48 = vrot.slane %v1735_v37, %v2969_v30  ;;  %v1779_v9 = vrot.slane %v1774_v61, %v2999_v54  ;;  %s3534_s18 = scalar_lea.hbm %s3668_s3, %s2102_s25 }
 0x238   : > { %2226 = vrcp.f32 %v752_v13  ;;  %v1692_v26 = vmul.f32 %v1691_v12, %v1684_v22  ;;  %v1693_v27 = vmul.f32 %v1691_v12, %v1685_v24 }
 0x23a   : > { %v1694_v29 = vadd.f32 %v1692_v26, %v1689_v11  ;;  %v1695_v31 = vadd.f32 %v1693_v27, %v1690_v16  ;;  %v1715_v58 = vpop.permute.xlu1 %1714  ;;  %v1752_v45 = vpop.permute.xlu0 %1751  ;;  %v1783_v11 = vrot.slane %v1774_v61, %v2969_v30 }
 0x23b   : > { %v1717_v34 = vsel %vm1716_vm8, %v1713_v62, %v1715_v58  ;;  %v1718_v32 = vsel %vm1716_vm8, %v1715_v58, %v1713_v62 }
 0x23c   : > { %v1708_v38 = vmul.f32 %v1701_v19, %v1694_v29  ;;  %v1709_v10 = vmul.f32 %v1705_v20, %v1695_v31  ;;  %v1728_v43 = vmul.f32 %v1727_v33, %v1717_v34  ;;  %v1729_v42 = vmul.f32 %v1727_v33, %v1718_v32 }
 0x23d   : > { %v1790_v20 = vstv %s659_s0  ;;  %s3669_s0 = sld [smem:[#allocation33_spill]] }
 0x23e   : > { %v1710_v3 = vadd.f32 %v1708_v38, %v1671_v25  ;;  %v1711_v40 = vadd.f32 %v1709_v10, %v1672_v14  ;;  %v1722_v44 = vpop.permute.xlu1 %1721  ;;  %v1759_v52 = vpop.permute.xlu0 %1758 }
 0x23f   : > { %v1723_v41 = vsel %vm1716_vm8, %v1720_v28, %v1722_v44  ;;  %v1724_v47 = vsel %vm1716_vm8, %v1722_v44, %v1720_v28  ;;  %v2242_v44 = vld [vmem:[%s2860_s19] sm:$0xff] }
 0x240   : > { %v1731_v49 = vmul.f32 %v1730_v39, %v1723_v41  ;;  %v1732_v4 = vmul.f32 %v1730_v39, %v1724_v47 }
 0x242   : > { %v2227_v50 = vpop.eup %2226  ;;  %v1733_v0 = vadd.f32 %v1731_v49, %v1728_v43  ;;  %v1734_v51 = vadd.f32 %v1732_v4, %v1729_v42  ;;  %v1754_v53 = vpop.permute.xlu1 %1753 }
 0x243   : > { %v1756_v56 = vsel %vm1755_vm9, %v1752_v45, %v1754_v53  ;;  %v1757_v57 = vsel %vm1755_vm9, %v1754_v53, %v1752_v45  ;;  %1807 = vperm.xlu0 %2221, %v2227_v50   ;;  %s3541_s19 = scalar_lea.hbm %s3669_s0, %s2102_s25 }
 0x244   : > { %v1747_v59 = vmul.f32 %v1740_v46, %v1733_v0  ;;  %v1748_v36 = vmul.f32 %v1744_v48, %v1734_v51  ;;  %v1767_v63 = vmul.f32 %v1766_v55, %v1756_v56  ;;  %v1768_v2 = vmul.f32 %v1766_v55, %v1757_v57 }
 0x246   : > { %v1749_v62 = vadd.f32 %v1747_v59, %v1710_v3  ;;  %v1750_v21 = vadd.f32 %v1748_v36, %v1711_v40  ;;  %v1761_v5 = vpop.permute.xlu1 %1760  ;;  %v2241_v40 = vld [vmem:[%s566_s17] sm:$0xff] }
 0x247   : > { %v1762_v7 = vsel %vm1755_vm9, %v1759_v52, %v1761_v5  ;;  %v1763_v6 = vsel %vm1755_vm9, %v1761_v5, %v1759_v52 }
 0x248   : > { %v1770_v12 = vmul.f32 %v1769_v23, %v1762_v7  ;;  %v1771_v13 = vmul.f32 %v1769_v23, %v1763_v6 }
 0x24a   : > { %v1772_v25 = vadd.f32 %v1770_v12, %v1767_v63  ;;  %v1773_v8 = vadd.f32 %v1771_v13, %v1768_v2 }
 0x24c   : > { %v1786_v14 = vmul.f32 %v1779_v9, %v1772_v25  ;;  %v1787_v16 = vmul.f32 %v1783_v11, %v1773_v8 }
 0x24e   : > { %v1788_v18 = vadd.f32 %v1786_v14, %v1749_v62  ;;  %v1789_v19 = vadd.f32 %v1787_v16, %v1750_v21 }
 0x250   : > { %v1791_v22 = vadd.f32 %v1790_v20, %v1788_v18  ;;  %v1792_v24 = vadd.f32 %v1790_v20, %v1789_v19 }
 0x252   : > { %v1793_v26 = vmax.f32 %v1791_v22, 0.0  ;;  %v1794_v27 = vmax.f32 %v1792_v24, 0.0 }
 0x254   : > { %v1795_v17 = vsub.f32 0.0, %v1793_v26  ;;  %v1796_v28 = vsub.f32 0.0, %v1794_v27 }
 0x256   : > { %v1797_v29 = vmul.f32 1.442695, %v1795_v17  ;;  %v1799_v31 = vmul.f32 1.442695, %v1796_v28 }
 0x258   : > { %2228 = vpow2.f32 %v1797_v29 }
 0x259   : > { %2230 = vpow2.f32 %v1799_v31 }
 0x262   : > { %v2229_v30 = vpop.eup %2228 }
 0x263   : > { %v2231_v58 = vpop.eup %2230  ;;  %v1801_v33 = vadd.f32 1.0, %v2229_v30 }
 0x264   : > { %v1802_v34 = vadd.f32 1.0, %v2231_v58 }
 0x265   : > { %2232 = vrcp.f32 %v1801_v33 }
 0x266   : > { %2234 = vrcp.f32 %v1802_v34 }
 0x26f   : > { %v2233_v32 = vpop.eup %2232 }
 0x270   : > { %v2235_v35 = vpop.eup %2234  ;;  %v1813_v37 = vrot.slane %v2233_v32, %v2999_v54 }
 0x271   : > { %v1817_v38 = vrot.slane %v2235_v35, %v2999_v54 }
 0x2c2   : > { %v1808_v10 = vpop.permute.xlu0 %1807 }
 0x2c3   : > { %v1818_v39 = vmul.f32 %v1813_v37, %v1808_v10  ;;  %v1819_v3 = vmul.f32 %v1817_v38, %v1808_v10 }
 0x2c5   : > { %v1820_v43 = vmul.f32 %v2241_v40, %v1818_v39  ;;  %v1821_v42 = vmul.f32 %v1819_v3, %v2848_v1  ;;  %v1827_v45 = vmul.f32 %v2242_v44, %v1818_v39  ;;  %v1828_v46 = vmul.f32 %v1819_v3, %v2863_v15 }
 0x2c7   : > { %v1824_v54 = vcombine.low %v1820_v43, %v1821_v42  ;;  %v1831_v41 = vcombine.low %v1827_v45, %v1828_v46 }
 0x2c9   : > { %1826 = vst [vmem:[%s636_s22] sm:$0xff] %v1824_v54  ;;  %1833 = vst [vmem:[%s643_s13] sm:$0xff] %v1831_v41 }
 0x2ca   : > { %2385 = shalt.err (!%p2382_p6)
}
 0x2cb   : > { %s2386_s25 = scalar_lea.hbm %s3534_s18, 128  ;;  %s2390_s30 = scalar_lea.hbm %s3668_s3, 256 }
 0x2cc   : > { %p2387_p3 = scmp.ne.s32.totalorder %s3534_s18, %s2386_s25  ;;  %p2391_p10 = scmp.lt.u32.totalorder %s3534_s18, %s3668_s3 }
 0x2cd   : > { %p2392_p4 = scmp.lt.u32.totalorder %s2390_s30, %s2386_s25  ;;  %p2394_p5 = scmp.lt.u32.totalorder %s2386_s25, %s3534_s18 }
 0x2ce   : > { %p2388_p7 = pnand %p2387_p3, %p3670_p8 }
 0x2cf   : > { %p2393_p12 = por %p2392_p4, %p2391_p10 }
 0x2d0   : > { %p2389_p9 = pneg %p2388_p7 }
 0x2d1   : > { %p2395_p11 = por %p2394_p5, %p2393_p12 }
 0x2d3   : > { %p2396_p13 = pnand %p2395_p11, %p2389_p9 }
 0x2d5   : > { %2399 = shalt.err (!%p2396_p13)
}
 0x2d6   : > { %2122 = dma.vmem_to_hbm [thread:$0]  (%p3670_p8), %s3536_s24, 128, %s3534_s18, %s1835_s14  }
 0x2d7   : > { %s1840_s5 = scalar_lea.sflag [#allocation15], %s2822_s6  ;;  %s2400_s8 = scalar_lea.vmem %s3543_s2, 128 }
 0x2d8   : > { %p2401_p0 = scmp.ne.s32.totalorder %s3543_s2, %s2400_s8  ;;  %s2515_s23 = smov [#allocation14]  }
 0x2d9   : > { %s2404_s25 = sshll.u32 %s2515_s23, 4  ;;  %s2405_s25 = int_to_ptr.vmem [resolvable:$false] %s2404_s25 }
 0x2da   : > { %p2402_p2 = pnand %p2401_p0, %p3670_p8  ;;  %s2406_s22 = scalar_lea.vmem %s2405_s25, 256 }
 0x2db   : > { %p2407_p6 = scmp.lt.s32.totalorder %s3543_s2, %s2405_s25  ;;  %p2408_p3 = scmp.lt.s32.totalorder %s2406_s22, %s2400_s8 }
 0x2dc   : > { %p2403_p1 = pneg %p2402_p2 }
 0x2dd   : > { %p2409_p7 = por %p2408_p3, %p2407_p6 }
 0x2df   : > { %p2410_p9 = pnand %p2409_p7, %p2403_p1 }
 0x2e1   : > { %2413 = shalt.err (!%p2410_p9)
}
 0x2e2   : > { %s2414_s6 = scalar_lea.hbm %s3541_s19, 128  ;;  %s2418_s14 = scalar_lea.hbm %s3669_s0, 256 }
 0x2e3   : > { %p2415_p10 = scmp.ne.s32.totalorder %s3541_s19, %s2414_s6  ;;  %p2419_p5 = scmp.lt.u32.totalorder %s3541_s19, %s3669_s0 }
 0x2e4   : > { %p2420_p11 = scmp.lt.u32.totalorder %s2418_s14, %s2414_s6  ;;  %p2422_p0 = scmp.lt.u32.totalorder %s2414_s6, %s3541_s19 }
 0x2e5   : > { %p2416_p4 = pnand %p2415_p10, %p3670_p8 }
 0x2e6   : > { %p2421_p13 = por %p2420_p11, %p2419_p5 }
 0x2e7   : > { %p2417_p12 = pneg %p2416_p4 }
 0x2e8   : > { %p2423_p2 = por %p2422_p0, %p2421_p13 }
 0x2ea   : > { %p2424_p1 = pnand %p2423_p2, %p2417_p12 }
 0x2ec   : > { %2427 = shalt.err (!%p2424_p1)
}
 0x2ed   : > { %2123 = dma.vmem_to_hbm [thread:$0]  (%p3670_p8), %s3543_s2, 128, %s3541_s19, %s1840_s5  }
 0x2ee PF: > { %s1880_s17 = sand.u32 1, %s2470_s26   ;;  %p3671_p6 = scmp.ne.s32.totalorder %s3653_s1, 0 }
 0x2ef   : > { %p3672_p3 = scmp.ge.s32.totalorder %s2482_s29, 2  ;;  %s1881_s4 = scalar_lea.sflag [#allocation5], %s1880_s17 }
 0x2f1   : > { %p2144_p7 = pnand %p3672_p3, %p3671_p6 }
 0x2f3   : > { %2461 = dma.done.wait (!%p2144_p7), %s1881_s4, 128  }
 0x2f4   : > { %2463 = vsyncadd (!%p2144_p7), %s1881_s4, 4294967168  ;;  %s1890_s8 = scalar_lea.sflag [#allocation15], %s1880_s17 }
 0x2f5   : > { %2465 = dma.done.wait (!%p2144_p7), %s1890_s8, 128  }
 0x2f6   : > { %2467 = vsyncadd (!%p2144_p7), %s1890_s8, 4294967168  ;;  %p38_p8 = scmp.ge.s32.totalorder %s2746_s21, 4   ;;  %s3673_s26 = smov %s2474_s27 }
 0x2f7   : > { %s3674_s27 = smov %s2478_s28  ;;  %s3675_s28 = smov %s2757_s20 }
 0x2f8   : > { %s3676_s29 = smov %s2746_s21  ;;  %40 = sbr.rel (!%p38_p8) target bundleno = 24 (0x18), region = 174 }
 0x2ff   :  { %1895 = vsyncpa [#allocation4], 1 }
 0x300   :  { %1897 = vsyncpa [#allocation4 + $0x1], 1 }
 0x301   :  { %1898 = vsyncpa [#allocation8], 1 }
 0x302   :  { %1899 = vsyncpa [#allocation11], 1 }
 0x303   :  { %1900 = vsyncpa [#allocation5], 1 }
 0x304   :  { %1902 = vsyncpa [#allocation5 + $0x1], 1 }
 0x305   :  { %1903 = vsyncpa [#allocation15], 1 }
 0x306   :  { %1905 = vsyncpa [#allocation15 + $0x1], 1 }
 0x307   :  { %1906 = vsyncpa [#allocation6], 1 }
 0x308   :  { %1908 = vsyncpa [#allocation6 + $0x1], 1 }

</bundles_post_ra>
